<compile_context>
chip_gen: v6e
topology: v6e:2x2x1
jax: 0.10.0
libtpu: 0.0.40
codegen_flags: <defaults>
</compile_context>

<pallas_src>
import jax
import jax.numpy as jnp
from jax.experimental import pallas as pl
from jax.experimental.pallas import tpu as pltpu


LANE = 128          # TPU lane width
MAX_TILE_B = 512    # batch-tile cap; sweepable 512-2048
BN_EPS = 1e-5


def _round_up(x, m):
    return ((x + m - 1) // m) * m


def _leaky_relu(z, slope=0.1):
    # single VPU max instead of compare+select
    return jnp.maximum(z, slope * z)


def mlp_kernel(x_ref,
               w1_ref, c1_ref,
               w2_ref, c2_ref,
               w3_ref, c3_ref,
               w4_ref, c4_ref,
               w5_ref, b5_ref,
               o_ref):
    """Fused 5-layer MLP; BN folded into weights, bf16 matmuls/activations,
    f32 accumulation, compact lane-dense (1, TILE_B) output per tile."""
    h = x_ref[...]                                            # (TILE_B, in_pad) bf16

    def layer(h, w_ref, c_ref):
        z = jnp.dot(h, w_ref[...],
                    preferred_element_type=jnp.float32)       # MXU, f32 acc
        z = z + c_ref[...]                                    # folded Linear+BN bias (f32)
        return _leaky_relu(z).astype(jnp.bfloat16)            # bf16 activations

    h = layer(h, w1_ref, c1_ref)    # (TILE_B, 512)
    h = layer(h, w2_ref, c2_ref)    # (TILE_B, 256)
    h = layer(h, w3_ref, c3_ref)    # (TILE_B, 128)
    h = layer(h, w4_ref, c4_ref)    # (TILE_B, 128)  (64 real + 64 zero-pad cols)

    # Final 1-unit layer, computed transposed (same NT pattern as q @ k^T):
    # (8, K) x (TILE_B, K) -> (8, TILE_B); only row 0 carries real weights.
    z5 = jax.lax.dot_general(
        w5_ref[...], h,
        dimension_numbers=(((1,), (1,)), ((), ())),
        preferred_element_type=jnp.float32)                   # (8, TILE_B) f32
    z0 = z5[0:1, :] + b5_ref[...]                             # (1, TILE_B) f32
    o_ref[...] = jax.nn.sigmoid(z0).reshape(o_ref.shape)      # lane-dense store


def improved_molecular_nn_forward(x, params, *, max_tile_b=MAX_TILE_B):
    """Run the fused Pallas kernel; returns (B, 1) sigmoid outputs."""
    B, in_dim = x.shape
    in_pad = params["w1"].shape[0]

    # Tile selection: big tiles amortize per-step overhead, but keep >= 2 grid
    # steps when the batch allows so both v7x TensorCores receive work.
    tile_b = min(max_tile_b, _round_up(pl.cdiv(B, 2), LANE))
    grid_b = pl.cdiv(B, tile_b)
    b_pad = grid_b * tile_b

    # Host-side: bf16 cast (halves the dominant input HBM stream) + zero pad
    # of batch rows and feature columns (w1 has matching zero rows).
    x = jnp.pad(x.astype(jnp.bfloat16),
                ((0, b_pad - B), (0, in_pad - in_dim)))

    weights = [
        params["w1"], params["c1"],
        params["w2"], params["c2"],
        params["w3"], params["c3"],
        params["w4"], params["c4"],
        params["w5"], params["b5"],
    ]

    # x / out blocked along batch; weights full-shape with a constant index_map
    # (DMA'd into VMEM once, resident across all batch tiles; <1 MiB total).
    in_specs = [pl.BlockSpec((tile_b, in_pad), lambda i: (i, 0))]
    in_specs += [pl.BlockSpec(w.shape, lambda i: (0, 0)) for w in weights]
    out_specs = pl.BlockSpec((1, 1, tile_b), lambda i: (i, 0, 0))

    fn = pl.pallas_call(
        mlp_kernel,
        out_shape=jax.ShapeDtypeStruct((grid_b, 1, tile_b), jnp.float32),
        grid=(grid_b,),
        in_specs=in_specs,
        out_specs=out_specs,
        compiler_params=pltpu.CompilerParams(
            dimension_semantics=("parallel",),     # shard batch tiles across TCs
            vmem_limit_bytes=32 * 1024 * 1024,     # headroom under v7x's 64 MiB
        ),
    )
    out = fn(x, *weights)                          # (grid_b, 1, tile_b)
    return out.reshape(b_pad, 1)[:B]


def init_raw_params(key, input_dim):
    """Deterministic synthetic parameters matching the PyTorch module layout."""
    dims = [input_dim, 512, 256, 128, 64, 1]
    keys = jax.random.split(key, 32)
    ki = iter(range(32))
    raw = {}
    for layer in range(1, 6):
        fan_in, fan_out = dims[layer - 1], dims[layer]
        bound = 1.0 / jnp.sqrt(float(fan_in))
        raw[f"w{layer}"] = jax.random.uniform(
            keys[next(ki)], (fan_out, fan_in), minval=-bound, maxval=bound,
            dtype=jnp.float32)
        raw[f"b{layer}"] = jax.random.uniform(
            keys[next(ki)], (fan_out,), minval=-bound, maxval=bound,
            dtype=jnp.float32)
        if layer <= 4:
            raw[f"gamma{layer}"] = 1.0 + 0.1 * jax.random.normal(
                keys[next(ki)], (fan_out,), jnp.float32)
            raw[f"beta{layer}"] = 0.1 * jax.random.normal(
                keys[next(ki)], (fan_out,), jnp.float32)
            raw[f"mean{layer}"] = 0.05 * jax.random.normal(
                keys[next(ki)], (fan_out,), jnp.float32)
            raw[f"var{layer}"] = jnp.abs(1.0 + 0.1 * jax.random.normal(
                keys[next(ki)], (fan_out,), jnp.float32))
    return raw


def prepare_params(raw, eps=BN_EPS):
    """Host-side folding: BN(eval) into Linear, bf16 weights, 128-padding of
    the input-feature dim, the layer-4 output dim, and the final layer."""
    in_dim = raw["w1"].shape[1]
    in_pad = _round_up(in_dim, LANE)
    p = {}
    for layer in range(1, 5):
        w = raw[f"w{layer}"].T.astype(jnp.float32)               # (in, out)
        b = raw[f"b{layer}"]
        scale = raw[f"gamma{layer}"] / jnp.sqrt(raw[f"var{layer}"] + eps)
        shift = raw[f"beta{layer}"] - raw[f"mean{layer}"] * scale
        w_f = w * scale[None, :]
        c_f = (b * scale + shift).reshape(1, -1)
        if layer == 1 and in_pad != in_dim:
            w_f = jnp.pad(w_f, ((0, in_pad - in_dim), (0, 0)))   # zero input rows
        if layer == 4:
            out_dim = w_f.shape[1]                               # 64
            out_pad = _round_up(out_dim, LANE)                   # 128
            w_f = jnp.pad(w_f, ((0, 0), (0, out_pad - out_dim)))
            c_f = jnp.pad(c_f, ((0, 0), (0, out_pad - out_dim)))
        p[f"w{layer}"] = w_f.astype(jnp.bfloat16)
        p[f"c{layer}"] = c_f.astype(jnp.float32)
    # Final layer: (1, 64) -> (8, 128); row 0 holds real weights, rest zero.
    w5 = raw["w5"]                                               # (1, 64)
    k5 = w5.shape[1]
    k5_pad = _round_up(k5, LANE)
    w5_p = jnp.zeros((8, k5_pad), jnp.float32).at[0, :k5].set(w5[0])
    p["w5"] = w5_p.astype(jnp.bfloat16)
    p["b5"] = raw["b5"].reshape(1, 1).astype(jnp.float32)
    return p


def reference_forward_folded(x, params):
    """Pure-JAX reference of the same folded / bf16 forward (validates kernel)."""
    in_pad = params["w1"].shape[0]
    _, in_dim = x.shape
    h = jnp.pad(x.astype(jnp.bfloat16), ((0, 0), (0, in_pad - in_dim)))
    for layer in range(1, 5):
        z = jnp.dot(h, params[f"w{layer}"],
                    preferred_element_type=jnp.float32) + params[f"c{layer}"]
        h = _leaky_relu(z).astype(jnp.bfloat16)
    z = jax.lax.dot_general(h, params["w5"],
                            dimension_numbers=(((1,), (1,)), ((), ())),
                            preferred_element_type=jnp.float32)  # (B, 8)
    z = z[:, :1] + params["b5"]
    return jax.nn.sigmoid(z)


def reference_forward_raw(x, raw, eps=BN_EPS):
    """f32 eval-mode reference matching the PyTorch module exactly."""
    h = x
    for layer in range(1, 5):
        z = h @ raw[f"w{layer}"].T + raw[f"b{layer}"]
        z = ((z - raw[f"mean{layer}"])
             * (raw[f"gamma{layer}"] / jnp.sqrt(raw[f"var{layer}"] + eps))
             + raw[f"beta{layer}"])
        h = jnp.where(z > 0, z, 0.1 * z)
        # dropout: identity in eval mode
    z = h @ raw["w5"].T + raw["b5"]
    return jax.nn.sigmoid(z)


if __name__ == "__main__":
    INPUT_DIM = 64
    BATCH = 200   # not a multiple of the tile on purpose: exercises grid=2 + padding

    key = jax.random.PRNGKey(0)
    k_x, k_p = jax.random.split(key)
    x = jax.random.normal(k_x, (BATCH, INPUT_DIM), dtype=jnp.float32)

    raw = init_raw_params(k_p, INPUT_DIM)
    params = prepare_params(raw)

    out = improved_molecular_nn_forward(x, params)
    out = jax.block_until_ready(out)
    assert out.shape == (BATCH, 1)

    # 1) Tight check against a JAX reference using the same bf16-folded params
    #    (validates the kernel itself).
    ref_folded = reference_forward_folded(x, params)
    d_folded = float(jnp.max(jnp.abs(out - ref_folded)))
    assert d_folded < 2e-3, f"kernel vs folded-bf16 reference: max diff {d_folded}"

    # 2) Looser check against the true f32 eval-mode module (bounds the bf16
    #    weight/activation quantization error).
    ref_raw = reference_forward_raw(x, raw)
    d_raw = float(jnp.max(jnp.abs(out - ref_raw)))
    assert d_raw < 5e-2, f"kernel vs f32 eval-mode reference: max diff {d_raw}"

    print("KERNEL_OK")
</pallas_src>

<mosaic_0001>
module attributes {stable_mosaic.version = 11 : i64} {
  func.func @mlp_kernel(%arg0: i32, %arg1: memref<128x128xbf16, #tpu.memory_space<vmem>>, %arg2: memref<128x512xbf16, #tpu.memory_space<vmem>>, %arg3: memref<1x512xf32, #tpu.memory_space<vmem>>, %arg4: memref<512x256xbf16, #tpu.memory_space<vmem>>, %arg5: memref<1x256xf32, #tpu.memory_space<vmem>>, %arg6: memref<256x128xbf16, #tpu.memory_space<vmem>>, %arg7: memref<1x128xf32, #tpu.memory_space<vmem>>, %arg8: memref<128x128xbf16, #tpu.memory_space<vmem>>, %arg9: memref<1x128xf32, #tpu.memory_space<vmem>>, %arg10: memref<8x128xbf16, #tpu.memory_space<vmem>>, %arg11: memref<1x1xf32, #tpu.memory_space<vmem>>, %arg12: memref<1x1x128xf32, #tpu.memory_space<vmem>>) attributes {dimension_semantics = [#tpu.dimension_semantics<parallel>], iteration_bounds = array<i64: 2>, scalar_prefetch = 0 : i64, scratch_operands = 0 : i64, tpu.core_type = #tpu.core_type<tc>, window_params = [{transform_indices = @transform_0, window_bounds = array<i64: 128, 128>}, {pipeline_mode = #tpu.pipeline_mode<synchronous>, transform_indices = @transform_1, window_bounds = array<i64: 128, 512>}, {pipeline_mode = #tpu.pipeline_mode<synchronous>, transform_indices = @transform_2, window_bounds = array<i64: 1, 512>}, {pipeline_mode = #tpu.pipeline_mode<synchronous>, transform_indices = @transform_3, window_bounds = array<i64: 512, 256>}, {pipeline_mode = #tpu.pipeline_mode<synchronous>, transform_indices = @transform_4, window_bounds = array<i64: 1, 256>}, {pipeline_mode = #tpu.pipeline_mode<synchronous>, transform_indices = @transform_5, window_bounds = array<i64: 256, 128>}, {pipeline_mode = #tpu.pipeline_mode<synchronous>, transform_indices = @transform_6, window_bounds = array<i64: 1, 128>}, {pipeline_mode = #tpu.pipeline_mode<synchronous>, transform_indices = @transform_7, window_bounds = array<i64: 128, 128>}, {pipeline_mode = #tpu.pipeline_mode<synchronous>, transform_indices = @transform_8, window_bounds = array<i64: 1, 128>}, {pipeline_mode = #tpu.pipeline_mode<synchronous>, transform_indices = @transform_9, window_bounds = array<i64: 8, 128>}, {pipeline_mode = #tpu.pipeline_mode<synchronous>, transform_indices = @transform_10, window_bounds = array<i64: 1, 1>}, {transform_indices = @transform_11, window_bounds = array<i64: 1, 1, 128>}]} {
    %c0 = arith.constant 0 : index
    %c0_0 = arith.constant 0 : index
    %0 = vector.load %arg1[%c0, %c0_0] : memref<128x128xbf16, #tpu.memory_space<vmem>>, vector<128x128xbf16>
    %c0_1 = arith.constant 0 : index
    %c0_2 = arith.constant 0 : index
    %1 = vector.load %arg2[%c0_1, %c0_2] : memref<128x512xbf16, #tpu.memory_space<vmem>>, vector<128x512xbf16>
    %cst = arith.constant dense<0.000000e+00> : vector<128x512xf32>
    %2 = tpu.matmul %0, %1, %cst {dimension_numbers = #tpu.dot_dimension_numbers<[1], [0], [0], [1], [0, 0, 1, 1], [], []>} : vector<128x128xbf16>, vector<128x512xbf16>, vector<128x512xf32> -> vector<128x512xf32>
    %c0_3 = arith.constant 0 : index
    %c0_4 = arith.constant 0 : index
    %3 = vector.load %arg3[%c0_3, %c0_4] : memref<1x512xf32, #tpu.memory_space<vmem>>, vector<1x512xf32>
    %4 = vector.broadcast %3 : vector<1x512xf32> to vector<128x512xf32>
    %5 = arith.addf %2, %4 : vector<128x512xf32>
    %cst_5 = arith.constant 1.000000e-01 : f32
    %6 = vector.broadcast %cst_5 : f32 to vector<128x512xf32>
    %7 = arith.mulf %6, %5 : vector<128x512xf32>
    %8 = arith.maximumf %5, %7 : vector<128x512xf32>
    %9 = arith.truncf %8 : vector<128x512xf32> to vector<128x512xbf16>
    %c0_6 = arith.constant 0 : index
    %c0_7 = arith.constant 0 : index
    %10 = vector.load %arg4[%c0_6, %c0_7] : memref<512x256xbf16, #tpu.memory_space<vmem>>, vector<512x256xbf16>
    %cst_8 = arith.constant dense<0.000000e+00> : vector<128x256xf32>
    %11 = tpu.matmul %9, %10, %cst_8 {dimension_numbers = #tpu.dot_dimension_numbers<[1], [0], [0], [1], [0, 0, 1, 1], [], []>} : vector<128x512xbf16>, vector<512x256xbf16>, vector<128x256xf32> -> vector<128x256xf32>
    %c0_9 = arith.constant 0 : index
    %c0_10 = arith.constant 0 : index
    %12 = vector.load %arg5[%c0_9, %c0_10] : memref<1x256xf32, #tpu.memory_space<vmem>>, vector<1x256xf32>
    %13 = vector.broadcast %12 : vector<1x256xf32> to vector<128x256xf32>
    %14 = arith.addf %11, %13 : vector<128x256xf32>
    %cst_11 = arith.constant 1.000000e-01 : f32
    %15 = vector.broadcast %cst_11 : f32 to vector<128x256xf32>
    %16 = arith.mulf %15, %14 : vector<128x256xf32>
    %17 = arith.maximumf %14, %16 : vector<128x256xf32>
    %18 = arith.truncf %17 : vector<128x256xf32> to vector<128x256xbf16>
    %c0_12 = arith.constant 0 : index
    %c0_13 = arith.constant 0 : index
    %19 = vector.load %arg6[%c0_12, %c0_13] : memref<256x128xbf16, #tpu.memory_space<vmem>>, vector<256x128xbf16>
    %cst_14 = arith.constant dense<0.000000e+00> : vector<128x128xf32>
    %20 = tpu.matmul %18, %19, %cst_14 {dimension_numbers = #tpu.dot_dimension_numbers<[1], [0], [0], [1], [0, 0, 1, 1], [], []>} : vector<128x256xbf16>, vector<256x128xbf16>, vector<128x128xf32> -> vector<128x128xf32>
    %c0_15 = arith.constant 0 : index
    %c0_16 = arith.constant 0 : index
    %21 = vector.load %arg7[%c0_15, %c0_16] : memref<1x128xf32, #tpu.memory_space<vmem>>, vector<1x128xf32>
    %22 = vector.broadcast %21 : vector<1x128xf32> to vector<128x128xf32>
    %23 = arith.addf %20, %22 : vector<128x128xf32>
    %cst_17 = arith.constant 1.000000e-01 : f32
    %24 = vector.broadcast %cst_17 : f32 to vector<128x128xf32>
    %25 = arith.mulf %24, %23 : vector<128x128xf32>
    %26 = arith.maximumf %23, %25 : vector<128x128xf32>
    %27 = arith.truncf %26 : vector<128x128xf32> to vector<128x128xbf16>
    %c0_18 = arith.constant 0 : index
    %c0_19 = arith.constant 0 : index
    %28 = vector.load %arg8[%c0_18, %c0_19] : memref<128x128xbf16, #tpu.memory_space<vmem>>, vector<128x128xbf16>
    %cst_20 = arith.constant dense<0.000000e+00> : vector<128x128xf32>
    %29 = tpu.matmul %27, %28, %cst_20 {dimension_numbers = #tpu.dot_dimension_numbers<[1], [0], [0], [1], [0, 0, 1, 1], [], []>} : vector<128x128xbf16>, vector<128x128xbf16>, vector<128x128xf32> -> vector<128x128xf32>
    %c0_21 = arith.constant 0 : index
    %c0_22 = arith.constant 0 : index
    %30 = vector.load %arg9[%c0_21, %c0_22] : memref<1x128xf32, #tpu.memory_space<vmem>>, vector<1x128xf32>
    %31 = vector.broadcast %30 : vector<1x128xf32> to vector<128x128xf32>
    %32 = arith.addf %29, %31 : vector<128x128xf32>
    %cst_23 = arith.constant 1.000000e-01 : f32
    %33 = vector.broadcast %cst_23 : f32 to vector<128x128xf32>
    %34 = arith.mulf %33, %32 : vector<128x128xf32>
    %35 = arith.maximumf %32, %34 : vector<128x128xf32>
    %36 = arith.truncf %35 : vector<128x128xf32> to vector<128x128xbf16>
    %c0_24 = arith.constant 0 : index
    %c0_25 = arith.constant 0 : index
    %37 = vector.load %arg10[%c0_24, %c0_25] : memref<8x128xbf16, #tpu.memory_space<vmem>>, vector<8x128xbf16>
    %cst_26 = arith.constant dense<0.000000e+00> : vector<8x128xf32>
    %38 = tpu.matmul %37, %36, %cst_26 {dimension_numbers = #tpu.dot_dimension_numbers<[1], [1], [0], [0], [0, 0, 1, 0], [], []>} : vector<8x128xbf16>, vector<128x128xbf16>, vector<8x128xf32> -> vector<8x128xf32>
    %39 = vector.extract_strided_slice %38 {offsets = [0, 0], sizes = [1, 128], strides = [1, 1]} : vector<8x128xf32> to vector<1x128xf32>
    %c0_27 = arith.constant 0 : index
    %c0_28 = arith.constant 0 : index
    %40 = vector.load %arg11[%c0_27, %c0_28] : memref<1x1xf32, #tpu.memory_space<vmem>>, vector<1x1xf32>
    %41 = vector.broadcast %40 : vector<1x1xf32> to vector<1x128xf32>
    %42 = arith.addf %39, %41 : vector<1x128xf32>
    %43 = arith.negf %42 : vector<1x128xf32>
    %44 = math.exp %43 : vector<1x128xf32>
    %cst_29 = arith.constant 1.000000e+00 : f32
    %45 = vector.broadcast %cst_29 : f32 to vector<1x128xf32>
    %46 = arith.addf %45, %44 : vector<1x128xf32>
    %47 = arith.divf %45, %46 : vector<1x128xf32>
    %48 = vector.shape_cast %47 : vector<1x128xf32> to vector<1x1x128xf32>
    %c0_30 = arith.constant 0 : index
    %c0_31 = arith.constant 0 : index
    %c0_32 = arith.constant 0 : index
    %49 = vector.load %arg12[%c0_30, %c0_31, %c0_32] : memref<1x1x128xf32, #tpu.memory_space<vmem>>, vector<1x1x128xf32>
    tpu.vector_store %arg12[%c0_30, %c0_31, %c0_32], %48 {strides = array<i32>} : memref<1x1x128xf32, #tpu.memory_space<vmem>>, vector<1x1x128xf32>,
    return
  }
  func.func @transform_0(%arg0: i32) -> (i32, i32) {
    %c0_i32 = arith.constant 0 : i32
    %c0_i32_0 = arith.constant 0 : i32
    return %arg0, %c0_i32 : i32, i32
  }
  func.func @transform_1(%arg0: i32) -> (i32, i32) {
    %c0_i32 = arith.constant 0 : i32
    %c0_i32_0 = arith.constant 0 : i32
    %c0_i32_1 = arith.constant 0 : i32
    return %c0_i32, %c0_i32_0 : i32, i32
  }
  func.func @transform_2(%arg0: i32) -> (i32, i32) {
    %c0_i32 = arith.constant 0 : i32
    %c0_i32_0 = arith.constant 0 : i32
    %c0_i32_1 = arith.constant 0 : i32
    return %c0_i32, %c0_i32_0 : i32, i32
  }
  func.func @transform_3(%arg0: i32) -> (i32, i32) {
    %c0_i32 = arith.constant 0 : i32
    %c0_i32_0 = arith.constant 0 : i32
    %c0_i32_1 = arith.constant 0 : i32
    return %c0_i32, %c0_i32_0 : i32, i32
  }
  func.func @transform_4(%arg0: i32) -> (i32, i32) {
    %c0_i32 = arith.constant 0 : i32
    %c0_i32_0 = arith.constant 0 : i32
    %c0_i32_1 = arith.constant 0 : i32
    return %c0_i32, %c0_i32_0 : i32, i32
  }
  func.func @transform_5(%arg0: i32) -> (i32, i32) {
    %c0_i32 = arith.constant 0 : i32
    %c0_i32_0 = arith.constant 0 : i32
    %c0_i32_1 = arith.constant 0 : i32
    return %c0_i32, %c0_i32_0 : i32, i32
  }
  func.func @transform_6(%arg0: i32) -> (i32, i32) {
    %c0_i32 = arith.constant 0 : i32
    %c0_i32_0 = arith.constant 0 : i32
    %c0_i32_1 = arith.constant 0 : i32
    return %c0_i32, %c0_i32_0 : i32, i32
  }
  func.func @transform_7(%arg0: i32) -> (i32, i32) {
    %c0_i32 = arith.constant 0 : i32
    %c0_i32_0 = arith.constant 0 : i32
    %c0_i32_1 = arith.constant 0 : i32
    return %c0_i32, %c0_i32_0 : i32, i32
  }
  func.func @transform_8(%arg0: i32) -> (i32, i32) {
    %c0_i32 = arith.constant 0 : i32
    %c0_i32_0 = arith.constant 0 : i32
    %c0_i32_1 = arith.constant 0 : i32
    return %c0_i32, %c0_i32_0 : i32, i32
  }
  func.func @transform_9(%arg0: i32) -> (i32, i32) {
    %c0_i32 = arith.constant 0 : i32
    %c0_i32_0 = arith.constant 0 : i32
    %c0_i32_1 = arith.constant 0 : i32
    return %c0_i32, %c0_i32_0 : i32, i32
  }
  func.func @transform_10(%arg0: i32) -> (i32, i32) {
    %c0_i32 = arith.constant 0 : i32
    %c0_i32_0 = arith.constant 0 : i32
    %c0_i32_1 = arith.constant 0 : i32
    return %c0_i32, %c0_i32_0 : i32, i32
  }
  func.func @transform_11(%arg0: i32) -> (i32, i32, i32) {
    %c0_i32 = arith.constant 0 : i32
    %c0_i32_0 = arith.constant 0 : i32
    %c0_i32_1 = arith.constant 0 : i32
    return %arg0, %c0_i32, %c0_i32_0 : i32, i32, i32
  }
}

</mosaic_0001>

<bundles_post_ra>
// kernel: tpu_custom_call.1
= control target key start
LH: loop header
LB: loop body
LE: loop exit
PB: predicated region body
PF: predicated region fallthrough
CT: control target
= control target key end

     0   :  { %s3906_s0 = inlined_call_operand.hbm [shape: bf16[256,128], index: 0, kind: input, shape index: {}]   ;;  %s3907_s1 = inlined_call_operand.hbm [shape: bf16[128,512], index: 1, kind: input, shape index: {}]   ;;  %s3908_s2 = inlined_call_operand.vmem [shape: f32[1,512], index: 2, kind: input, shape index: {}]   ;;  %s3909_s3 = inlined_call_operand.hbm [shape: bf16[512,256], index: 3, kind: input, shape index: {}]   ;;  %s3910_s4 = inlined_call_operand.hbm [shape: f32[1,256], index: 4, kind: input, shape index: {}]   ;;  %s3911_s5 = inlined_call_operand.hbm [shape: bf16[256,128], index: 5, kind: input, shape index: {}]   ;;  %s3912_s6 = inlined_call_operand.vmem [shape: f32[1,128], index: 6, kind: input, shape index: {}]   ;;  %s3913_s7 = inlined_call_operand.hbm [shape: bf16[128,128], index: 7, kind: input, shape index: {}]   ;;  %s3914_s8 = inlined_call_operand.vmem [shape: f32[1,128], index: 8, kind: input, shape index: {}]   ;;  %s3915_s9 = inlined_call_operand.vmem [shape: bf16[8,128], index: 9, kind: input, shape index: {}]   ;;  %s3916_s10 = inlined_call_operand.<no memory space> [shape: f32[1,1], index: 10, kind: input, shape index: {}]   ;;  %s3917_s11 = inlined_call_operand.hbm [shape: f32[2,1,128], index: 11, kind: output, shape index: {}]  }
   0x1   :  { %3924 = sst [smem:[#allocation20_spill]] %s3907_s1  ;;  %v16_v0 = vstv %s3916_s10 }
   0x2   :  { %3925 = sst [smem:[#allocation21_spill]] %s3909_s3  ;;  %17 = vst [vmem:[#allocation2] sm:$0x1] %v16_v0 }
   0x3   :  { %3926 = sst [smem:[#allocation22_spill]] %s3910_s4 }
   0x4   :  { %3927 = sst [smem:[#allocation23_spill]] %s3911_s5 }
   0x5   :  { %18 = vsyncpa [#allocation4], 0 }
   0x6   :  { %20 = vsyncpa [#allocation4 + $0x1], 0 }
   0x7   :  { %21 = vsyncpa [#allocation7], 0 }
   0x8   :  { %22 = vsyncpa [#allocation10], 0 }
   0x9   :  { %23 = vsyncpa [#allocation13], 0 }
   0xa   :  { %24 = vsyncpa [#allocation5], 0 }
   0xb   :  { %26 = vsyncpa [#allocation5 + $0x1], 0  ;;  %s3407_s19 = smov 0   ;;  %s3409_s20 = smov 0  }
   0xc   :  { %s3411_s21 = smov 0   ;;  %s3413_s22 = smov 0  }
   0xd LB: > { %s3328_s10 = smov [#allocation6]   ;;  %s3428_s24 = sadd.s32 4294967295, %s3326_s22   ;;  %s3326_s22 = sphi %s3413_s22, %s3956_s22   ;;  %s3322_s21 = sphi %s3411_s21, %s3955_s21   ;;  %s3318_s20 = sphi %s3409_s20, %s3954_s20   ;;  %s3314_s19 = sphi %s3407_s19, %s3953_s19  }
   0xe   : > { %s311_s23 = sshll.u32 %s3328_s10, 4  ;;  %p2512_p0 = scmp.ge.s32.totalorder %s3326_s22, 1  ;;  %s312_s23 = int_to_ptr.vmem [resolvable:$true] %s311_s23 }
   0xf   : > { %p3918_p1 = scmp.eq.s32.totalorder %s3428_s24, 0  ;;  %p299_p2 = scmp.lt.s32.totalorder %s3326_s22, 3 }
  0x10   : > { %s3329_s26 = smov [#allocation9]   ;;  %s3330_s29 = smov [#allocation8]  }
  0x11   : > { %p3433_p3 = pnand %p2512_p0, %p299_p2  ;;  %s341_s27 = sshll.u32 %s3329_s26, 4  ;;  %s342_s27 = int_to_ptr.vmem [resolvable:$true] %s341_s27 }
  0x12   : > { %s327_s30 = sshll.u32 %s3330_s29, 4  ;;  %s3103_s13 = scalar_lea.vmem %s312_s23, 4096  ;;  %s3446_s30 = int_to_ptr.vmem [resolvable:$true] %s327_s30 }
  0x13   : > { %s3928_s25 = scalar_select %p3433_p3, 1, 0 }
  0x14   : > { %p2829_p5 = pneg %p3433_p3  ;;  %p3104_p8 = scmp.ne.s32.totalorder %s312_s23, %s3103_s13 }
  0x15   : > { %p3111_p11 = scmp.lt.s32.totalorder %s312_s23, %s312_s23  ;;  %p3112_p12 = scmp.lt.s32.totalorder %s3103_s13, %s3103_s13 }
  0x16   : > { %p3442_p6 = pnand %p2829_p5, %p3918_p1 }
  0x17   : > { %p3113_p13 = por %p3112_p12, %p3111_p11 }
  0x18   : > { %p3450_p7 = pneg %p3442_p6 }
  0x1a   : > { %p3106_p9 = pnand %p3104_p8, %p3450_p7 }
  0x1c   : > { %p3107_p10 = pneg %p3106_p9 }
  0x1e   : > { %p3114_p0 = pnand %p3113_p13, %p3107_p10 }
  0x20   : > { %3117 = shalt.err (!%p3114_p0)
}
  0x21   : > { %s3331_s14 = smov 256   ;;  %s3332_s15 = smov 16  }
  0x22   : > { %s3931_s1 = sld [smem:[#allocation20_spill]]  ;;  %s3129_s18 = scalar_lea.vmem %s342_s27, 32 }
  0x23   : > { %p3130_p2 = scmp.ne.s32.totalorder %s342_s27, %s3129_s18  ;;  %p3137_p9 = scmp.lt.s32.totalorder %s342_s27, %s342_s27 }
  0x24   : > { %p3138_p4 = scmp.lt.s32.totalorder %s3129_s18, %s3129_s18 }
  0x25   : > { %p3132_p5 = pnand %p3130_p2, %p3450_p7 }
  0x26   : > { %p3139_p1 = por %p3138_p4, %p3137_p9 }
  0x27   : > { %p3133_p8 = pneg %p3132_p5 }
  0x28   : > { %2832 = dma.hbm_to_vmem [thread:$0]  (!%p3442_p6), %s3931_s1, 4096, %s312_s23, [#allocation7], %s3331_s14, %s3331_s14, %s3332_s15  }
  0x29   : > { %p3140_p11 = pnand %p3139_p1, %p3133_p8 }
  0x2b   : > { %3143 = shalt.err (!%p3140_p11)
}
  0x2c   : > { %s3932_s4 = sld [smem:[#allocation22_spill]]  ;;  %s3155_s23 = scalar_lea.vmem %s3446_s30, 8192 }
  0x2d   : > { %p3156_p10 = scmp.ne.s32.totalorder %s3446_s30, %s3155_s23  ;;  %p3163_p0 = scmp.lt.s32.totalorder %s3446_s30, %s3446_s30 }
  0x2e   : > { %p3164_p4 = scmp.lt.s32.totalorder %s3155_s23, %s3155_s23 }
  0x2f   : > { %p3158_p12 = pnand %p3156_p10, %p3450_p7 }
  0x30   : > { %p3165_p1 = por %p3164_p4, %p3163_p0 }
  0x31   : > { %p3159_p13 = pneg %p3158_p12 }
  0x32   : > { %2838 = dma.hbm_to_vmem [thread:$0]  (!%p3442_p6), %s3932_s4, 32, %s342_s27, [#allocation10]  }
  0x33   : > { %p3166_p2 = pnand %p3165_p1, %p3159_p13 }
  0x35   : > { %3169 = shalt.err (!%p3166_p2)
}
  0x36   : > { %s3333_s29 = smov 128   ;;  %s3334_s13 = smov 8  }
  0x37   : > { %s3933_s3 = sld [smem:[#allocation21_spill]]  ;;  %s3335_s27 = smov [#allocation11]  }
  0x38   : > { %s351_s16 = sshll.u32 %s3335_s27, 4  ;;  %s352_s16 = int_to_ptr.vmem [resolvable:$true] %s351_s16 }
  0x39   : > { %s3181_s17 = scalar_lea.vmem %s352_s16, 2048  ;;  %p3189_p11 = scmp.lt.s32.totalorder %s352_s16, %s352_s16 }
  0x3a   : > { %p3182_p5 = scmp.ne.s32.totalorder %s352_s16, %s3181_s17  ;;  %p3190_p10 = scmp.lt.s32.totalorder %s3181_s17, %s3181_s17 }
  0x3c   : > { %p3184_p8 = pnand %p3182_p5, %p3450_p7  ;;  %p3191_p12 = por %p3190_p10, %p3189_p11 }
  0x3d   : > { %2835 = dma.hbm_to_vmem [thread:$0]  (!%p3442_p6), %s3933_s3, 8192, %s3446_s30, [#allocation7], %s3333_s29, %s3333_s29, %s3334_s13  }
  0x3e   : > { %p3185_p9 = pneg %p3184_p8 }
  0x40   : > { %p3192_p13 = pnand %p3191_p12, %p3185_p9 }
  0x42   : > { %3195 = shalt.err (!%p3192_p13)
}
  0x43   : > { %s3919_s18 = smov 64   ;;  %s3920_s10 = smov 4  }
  0x44   : > { %s3934_s5 = sld [smem:[#allocation23_spill]]  ;;  %s3338_s23 = smov [#allocation12]  }
  0x45   : > { %s367_s29 = sshll.u32 %s3338_s23, 4  ;;  %s368_s29 = int_to_ptr.vmem [resolvable:$true] %s367_s29 }
  0x46   : > { %s3207_s13 = scalar_lea.vmem %s368_s29, 1024  ;;  %p3215_p2 = scmp.lt.s32.totalorder %s368_s29, %s368_s29 }
  0x47   : > { %p3208_p0 = scmp.ne.s32.totalorder %s368_s29, %s3207_s13  ;;  %p3216_p5 = scmp.lt.s32.totalorder %s3207_s13, %s3207_s13 }
  0x49   : > { %p3210_p4 = pnand %p3208_p0, %p3450_p7  ;;  %p3217_p8 = por %p3216_p5, %p3215_p2 }
  0x4a   : > { %2841 = dma.hbm_to_vmem [thread:$0]  (!%p3442_p6), %s3934_s5, 2048, %s352_s16, [#allocation10], %s3919_s18, %s3919_s18, %s3920_s10  }
  0x4b   : > { %p3211_p1 = pneg %p3210_p4 }
  0x4d   : > { %p3218_p9 = pnand %p3217_p8, %p3211_p1 }
  0x4f   : > { %3221 = shalt.err (!%p3218_p9)
}
  0x50   : > { %2844 = dma.hbm_to_vmem [thread:$0]  (!%p3442_p6), %s3913_s7, 1024, %s368_s29, [#allocation13], %s3919_s18, %s3919_s18, %s3920_s10  }
  0x51   : > { %s2511_s28 = sadd.s32 4294967294, %s3326_s22   ;;  %s3502_s12 = sadd.s32 1, %s3326_s22  }
  0x52   : > { %s39_s27 = sadd.s32 1, %s3322_s21  ;;  %s36_s16 = ssub.s32 %s3326_s22, %s3502_s12 }
  0x53   : > { %p46_p7 = scmp.ne.s32.totalorder %s3322_s21, %s3318_s20  ;;  %p37_p11 = scmp.eq.s32.totalorder %s36_s16, 0 }
  0x54   : > { %p47_p10 = scmp.eq.s32.totalorder %s3326_s22, 0  ;;  %p52_p12 = scmp.ne.s32.totalorder %s3318_s20, %s3314_s19 }
  0x55   : > { %p286_p13 = scmp.eq.s32.totalorder %s3428_s24, 1  ;;  %p3935_p4 = scmp.eq.s32.totalorder %s3428_s24, 0 }
  0x56   : > { %s3514_s17 = scalar_select %p37_p11, %s3322_s21, %s39_s27  }
  0x57   : > { %p48_p0 = por %p47_p10, %p46_p7  ;;  %p3518_p1 = por %p3935_p4, %p52_p12 }
  0x58   : > { %p3522_p6 = por %p286_p13, %p46_p7  ;;  %p292_p2 = scmp.eq.s32.totalorder %s2511_s28, 1 }
  0x59   : > { %s3936_s30 = scalar_select %p3518_p1, 1, 0 }
  0x5a   : > { %s3937_s26 = scalar_select %p3522_p6, 1, 0 }
  0x5b   : > { %p2858_p5 = scmp.lt.s32.totalorder %s3326_s22, 2  ;;  %s390_s23 = sand.u32 1, %s3322_s21  }
  0x5c   : > { %p3528_p8 = por %p292_p2, %p52_p12  ;;  %s2519_s13 = sshll.u32 %s390_s23, 6 }
  0x5d   : > { %s2663_s14 = sshll.u32 %s3326_s22, 10  ;;  %s394_s18 = scalar_lea.vmem [#allocation3], %s2519_s13 }
  0x5e   : > { %s3938_s29 = scalar_select %p3528_p8, 1, 0 }
  0x5f   : > { %s3536_s16 = scalar_lea.hbm %s3906_s0, %s2663_s14  ;;  %s401_s10 = sshll.u32 %s394_s18, 4  ;;  %s3542_s10 = int_to_ptr.vmem [resolvable:$true] %s401_s10 }
  0x60   : > { %p3538_p9 = pnand %p2858_p5, %p48_p0  ;;  %s3544_s1 = scalar_lea.sflag [#allocation4], %s390_s23 }
  0x61   : > { %s3222_s3 = scalar_lea.hbm %s3536_s16, 1024  ;;  %s3227_s13 = scalar_lea.hbm %s3906_s0, 2048 }
  0x62   : > { %p3223_p7 = scmp.ne.s32.totalorder %s3536_s16, %s3222_s3  ;;  %p3224_p11 = pneg %p3538_p9 }
  0x63   : > { %p3228_p13 = scmp.lt.s32.totalorder %s3536_s16, %s3906_s0  ;;  %p3229_p0 = scmp.lt.s32.totalorder %s3227_s13, %s3222_s3 }
  0x64   : > { %p3225_p10 = pnand %p3224_p11, %p3223_p7 }
  0x65   : > { %p3230_p4 = por %p3229_p0, %p3228_p13 }
  0x66   : > { %p3226_p12 = pneg %p3225_p10 }
  0x68   : > { %p3231_p2 = pnand %p3230_p4, %p3226_p12 }
  0x6a   : > { %3234 = shalt.err (!%p3231_p2)
}
  0x6b   : > { %s3235_s23 = scalar_lea.vmem %s3542_s10, 1024  ;;  %s3339_s4 = smov [#allocation3]  }
  0x6c   : > { %p3236_p5 = scmp.ne.s32.totalorder %s3542_s10, %s3235_s23  ;;  %s3240_s5 = sshll.u32 %s3339_s4, 4  ;;  %s3241_s5 = int_to_ptr.vmem [resolvable:$false] %s3240_s5 }
  0x6d   : > { %s3242_s14 = scalar_lea.vmem %s3241_s5, 2048  ;;  %p3243_p10 = scmp.lt.s32.totalorder %s3542_s10, %s3241_s5 }
  0x6e   : > { %p3238_p8 = pnand %p3236_p5, %p3224_p11  ;;  %p3244_p6 = scmp.lt.s32.totalorder %s3242_s14, %s3235_s23 }
  0x70   : > { %p3239_p7 = pneg %p3238_p8  ;;  %p3245_p1 = por %p3244_p6, %p3243_p10 }
  0x72   : > { %p3246_p3 = pnand %p3245_p1, %p3239_p7 }
  0x74   : > { %3249 = shalt.err (!%p3246_p3)
}
  0x75   : > { %s3940_s3 = smov 4   ;;  %s3941_s15 = smov 64  }
  0x76   : > { %2848 = dma.hbm_to_vmem [thread:$0]  (!%p3538_p9), %s3536_s16, 1024, %s3542_s10, %s3544_s1, %s3941_s15, %s3941_s15, %s3940_s3  }
  0x77   : > { %p3942_p8 = scmp.ne.s32.totalorder %s3928_s25, 0 }
  0x78   : > { %s3571_s4 = sand.u32 (!%p3942_p8), 1, %s3318_s20   ;;  %p3943_p3 = scmp.ne.s32.totalorder (!%p3942_p8), %s3936_s30, 0 }
  0x79   : > { %413 = sbr.rel (%p3942_p8) target bundleno = 1361 (0x551), region = 64  ;;  %s2523_s5 = sshll.u32 (!%p3942_p8), %s3571_s4, 6 }
  0x7a   : > { %s416_s13 = scalar_lea.sflag (!%p3942_p8), [#allocation4], %s3571_s4  ;;  %s3575_s18 = scalar_lea.vmem (!%p3942_p8), [#allocation3], %s2523_s5 }
  0x7e   : > { %3293 = dma.done.wait (%p3943_p3), %s416_s13, 1024  }
  0x7f   : > { %3295 = vsyncadd (%p3943_p3), %s416_s13, 4294966272  ;;  %p3944_p1 = scmp.eq.s32.totalorder %s3428_s24, 0 }
  0x81   : > { %3297 = dma.done.wait (%p3944_p1), [#allocation7], 12288   ;;  %p3945_p6 = pmov %p3944_p1 }
  0x82   : > { %p3946_p9 = pmov %p3944_p1 }
  0x83   : > { %3299 = vsyncadd (%p3945_p6), [#allocation7], 4294955008 }
  0x84   : > { %3301 = dma.done.wait (%p3946_p9), [#allocation10], 2080   ;;  %p3947_p11 = pmov %p3944_p1 }
  0x85   : > { %p3948_p12 = pmov %p3944_p1 }
  0x86   : > { %3303 = vsyncadd (%p3947_p11), [#allocation10], 4294965216 }
  0x87   : > { %3305 = dma.done.wait (%p3948_p12), [#allocation13], 1024   ;;  %p3949_p13 = pmov %p3944_p1 }
  0x88   : > { %v3340_v1 = vmov 0   ;;  %v2912_v2 = vld [vmem:[#allocation6 + $0xe4] ss:$16 sps:$4 sm:$0xff]   ;;  %v2914_v3 = vld [vmem:[#allocation6 + $0xec] ss:$16 sps:$4 sm:$0xff]   ;;  %vm3342_vm0 = vmmov 0  }
  0x89   : > { %3307 = vsyncadd (%p3949_p13), [#allocation13], 4294966272  ;;  %789 = vmatprep.mubr.bf16.mxu0 %v3340_v1  ;;  %902 = vmatprep.mubr.bf16.mxu1 %v3340_v1  ;;  %v2916_v4 = vld [vmem:[#allocation6 + $0xe0] ss:$16 sps:$4 sm:$0xff]   ;;  %v2917_v5 = vld [vmem:[#allocation6 + $0xe8] ss:$16 sps:$4 sm:$0xff]  }
  0x8a   : > { %2911 = vset.pattern.permute.xlu0 %v3340_v1  ;;  %757 = vmatprep.subr.bf16.mxu0 %v2912_v2  ;;  %v2918_v6 = vld [vmem:[#allocation6 + $0xc4] ss:$16 sps:$4 sm:$0xff]   ;;  %v2920_v7 = vld [vmem:[#allocation6 + $0xcc] ss:$16 sps:$4 sm:$0xff]   ;;  %v2922_v8 = vld [vmem:[#allocation6 + $0xc0] ss:$16 sps:$4 sm:$0xff]  }
  0x8b   : > { %870 = vmatprep.subr.bf16.mxu1 %v2914_v3  ;;  %758 = vmatpush1.bf16.msra.mxu0 %v2916_v4  ;;  %v2923_v9 = vld [vmem:[#allocation6 + $0xc8] ss:$16 sps:$4 sm:$0xff]   ;;  %v2924_v10 = vld [vmem:[#allocation6 + $0xa4] ss:$16 sps:$4 sm:$0xff]   ;;  %v2926_v11 = vld [vmem:[#allocation6 + $0xac] ss:$16 sps:$4 sm:$0xff]  }
  0x8c   : > { %871 = vmatpush1.bf16.msra.mxu1 %v2917_v5  ;;  %759 = vmatprep.subr.bf16.mxu0 %v2918_v6  ;;  %v2928_v12 = vld [vmem:[#allocation6 + $0xa0] ss:$16 sps:$4 sm:$0xff]   ;;  %v2929_v13 = vld [vmem:[#allocation6 + $0xa8] ss:$16 sps:$4 sm:$0xff]   ;;  %v2930_v14 = vld [vmem:[#allocation6 + $0x84] ss:$16 sps:$4 sm:$0xff]  }
  0x8d   : > { %872 = vmatprep.subr.bf16.mxu1 %v2920_v7  ;;  %v2932_v15 = vld [vmem:[#allocation6 + $0x8c] ss:$16 sps:$4 sm:$0xff]   ;;  %v2934_v16 = vld [vmem:[#allocation6 + $0x80] ss:$16 sps:$4 sm:$0xff]   ;;  %v2935_v17 = vld [vmem:[#allocation6 + $0x88] ss:$16 sps:$4 sm:$0xff]  }
  0x8e   : > { %v2936_v18 = vld [vmem:[#allocation6 + $0x64] ss:$16 sps:$4 sm:$0xff]   ;;  %v2938_v19 = vld [vmem:[#allocation6 + $0x6c] ss:$16 sps:$4 sm:$0xff]   ;;  %v2940_v20 = vld [vmem:[#allocation6 + $0x60] ss:$16 sps:$4 sm:$0xff]  }
  0x8f   : > { %760 = vmatpush1.bf16.msra.mxu0 %v2922_v8  ;;  %v2941_v21 = vld [vmem:[#allocation6 + $0x68] ss:$16 sps:$4 sm:$0xff]   ;;  %v2942_v22 = vld [vmem:[#allocation6 + $0x44] ss:$16 sps:$4 sm:$0xff]   ;;  %v2944_v23 = vld [vmem:[#allocation6 + $0x4c] ss:$16 sps:$4 sm:$0xff]  }
  0x90   : > { %873 = vmatpush1.bf16.msra.mxu1 %v2923_v9  ;;  %761 = vmatprep.subr.bf16.mxu0 %v2924_v10  ;;  %v2946_v24 = vld [vmem:[#allocation6 + $0x40] ss:$16 sps:$4 sm:$0xff]   ;;  %v2947_v25 = vld [vmem:[#allocation6 + $0x48] ss:$16 sps:$4 sm:$0xff]   ;;  %v2948_v26 = vld [vmem:[#allocation6 + $0x24] ss:$16 sps:$4 sm:$0xff]  }
  0x91   : > { %874 = vmatprep.subr.bf16.mxu1 %v2926_v11  ;;  %v2950_v27 = vld [vmem:[#allocation6 + $0x2c] ss:$16 sps:$4 sm:$0xff]   ;;  %v2952_v28 = vld [vmem:[#allocation6 + $0x20] ss:$16 sps:$4 sm:$0xff]   ;;  %v2953_v29 = vld [vmem:[#allocation6 + $0x28] ss:$16 sps:$4 sm:$0xff]  }
  0x92   : > { %v2954_v30 = vld [vmem:[#allocation6 + $0x4] ss:$16 sps:$4 sm:$0xff]   ;;  %v2956_v31 = vld [vmem:[#allocation6 + $0xc] ss:$16 sps:$4 sm:$0xff]   ;;  %v2958_v32 = vld [vmem:[#allocation6] ss:$16 sps:$4 sm:$0xff]  }
  0x93   : > { %762 = vmatpush1.bf16.msra.mxu0 %v2928_v12  ;;  %v2959_v33 = vld [vmem:[#allocation6 + $0x8] ss:$16 sps:$4 sm:$0xff]   ;;  %v2970_v34 = vld [vmem:[#allocation8 + $0x74] ss:$8 sps:$4 sm:$0xff]   ;;  %v2960_v35 = vld [vmem:[%s3575_s18] sm:$0xff]   ;;  %s2660_s14 = sshll.u32 %s3428_s24, 4 }
  0x94   : > { %875 = vmatpush1.bf16.msra.mxu1 %v2929_v13  ;;  %763 = vmatprep.subr.bf16.mxu0 %v2930_v14  ;;  %v2973_v36 = vld [vmem:[#allocation8 + $0x174] ss:$8 sps:$4 sm:$0xff]   ;;  %v2968_v37 = vld [vmem:[#allocation8 + $0x70] ss:$8 sps:$4 sm:$0xff]   ;;  %v2976_v39 = vld [vmem:[#allocation8 + $0x64] ss:$8 sps:$4 sm:$0xff]  }
  0x95   : > { %876 = vmatprep.subr.bf16.mxu1 %v2932_v15  ;;  %v2971_v38 = vld [vmem:[#allocation8 + $0x170] ss:$8 sps:$4 sm:$0xff]   ;;  %v2979_v40 = vld [vmem:[#allocation8 + $0x164] ss:$8 sps:$4 sm:$0xff]   ;;  %v2974_v41 = vld [vmem:[#allocation8 + $0x60] ss:$8 sps:$4 sm:$0xff]  }
  0x96   : > { %v2977_v42 = vld [vmem:[#allocation8 + $0x160] ss:$8 sps:$4 sm:$0xff]   ;;  %v2982_v43 = vld [vmem:[#allocation8 + $0x54] ss:$8 sps:$4 sm:$0xff]   ;;  %v2980_v46 = vld [vmem:[#allocation8 + $0x50] ss:$8 sps:$4 sm:$0xff]  }
  0x97   : > { %764 = vmatpush1.bf16.msra.mxu0 %v2934_v16  ;;  %v2985_v44 = vld [vmem:[#allocation8 + $0x154] ss:$8 sps:$4 sm:$0xff]   ;;  %v2961_v45 = vld [vmem:[%s3575_s18 + $0x8] sm:$0xff]   ;;  %v2983_v47 = vld [vmem:[#allocation8 + $0x150] ss:$8 sps:$4 sm:$0xff]   ;;  %s476_s3 = scalar_lea.vmem [#allocation14], %s3571_s4 }
  0x98   : > { %877 = vmatpush1.bf16.msra.mxu1 %v2935_v17  ;;  %765 = vmatprep.subr.bf16.mxu0 %v2936_v18  ;;  %v2988_v48 = vld [vmem:[#allocation8 + $0x44] ss:$8 sps:$4 sm:$0xff]   ;;  %v2986_v50 = vld [vmem:[#allocation8 + $0x40] ss:$8 sps:$4 sm:$0xff]   ;;  %v2994_v52 = vld [vmem:[#allocation8 + $0x34] ss:$8 sps:$4 sm:$0xff]  }
  0x99   : > { %878 = vmatprep.subr.bf16.mxu1 %v2938_v19  ;;  %v2991_v49 = vld [vmem:[#allocation8 + $0x144] ss:$8 sps:$4 sm:$0xff]   ;;  %v2989_v51 = vld [vmem:[#allocation8 + $0x140] ss:$8 sps:$4 sm:$0xff]   ;;  %v2997_v53 = vld [vmem:[#allocation8 + $0x134] ss:$8 sps:$4 sm:$0xff]  }
  0x9a   : > { %v2962_v54 = vld [vmem:[%s3575_s18 + $0x10] sm:$0xff]   ;;  %v3000_v57 = vld [vmem:[#allocation8 + $0x24] ss:$8 sps:$4 sm:$0xff]   ;;  %v2998_v59 = vld [vmem:[#allocation8 + $0x20] ss:$8 sps:$4 sm:$0xff]   ;;  %s2397_s15 = sshll.u32 %s476_s3, 4  ;;  %s2398_s15 = int_to_ptr.vmem [resolvable:$true] %s2397_s15 }
  0x9b   : > { %766 = vmatpush1.bf16.msra.mxu0 %v2940_v20  ;;  %v2992_v55 = vld [vmem:[#allocation8 + $0x30] ss:$8 sps:$4 sm:$0xff]   ;;  %v3003_v58 = vld [vmem:[#allocation8 + $0x124] ss:$8 sps:$4 sm:$0xff]   ;;  %v3001_v60 = vld [vmem:[#allocation8 + $0x120] ss:$8 sps:$4 sm:$0xff]  }
  0x9c   : > { %879 = vmatpush1.bf16.msra.mxu1 %v2941_v21  ;;  %767 = vmatprep.subr.bf16.mxu0 %v2942_v22  ;;  %v2995_v56 = vld [vmem:[#allocation8 + $0x130] ss:$8 sps:$4 sm:$0xff]   ;;  %v3006_v61 = vld [vmem:[#allocation8 + $0x14] ss:$8 sps:$4 sm:$0xff]   ;;  %v3012_v3 = vld [vmem:[#allocation8 + $0x4] ss:$8 sps:$4 sm:$0xff]  }
  0x9d   : > { %880 = vmatprep.subr.bf16.mxu1 %v2944_v23  ;;  %v3009_v62 = vld [vmem:[#allocation8 + $0x114] ss:$8 sps:$4 sm:$0xff]   ;;  %v3004_v0 = vld [vmem:[#allocation8 + $0x10] ss:$8 sps:$4 sm:$0xff]   ;;  %v3015_v4 = vld [vmem:[#allocation8 + $0x104] ss:$8 sps:$4 sm:$0xff]  }
  0x9e   : > { %v2963_v63 = vld [vmem:[%s3575_s18 + $0x18] sm:$0xff]   ;;  %v3010_v5 = vld [vmem:[#allocation8] ss:$8 sps:$4 sm:$0xff]   ;;  %v3024_v12 = vld [vmem:[#allocation8 + $0xe4] ss:$8 sps:$4 sm:$0xff]   ;;  %s2385_s1 = scalar_lea.sflag [#allocation5], %s3571_s4 }
  0x9f   : > { %768 = vmatpush1.bf16.msra.mxu0 %v2946_v24  ;;  %v3007_v2 = vld [vmem:[#allocation8 + $0x110] ss:$8 sps:$4 sm:$0xff]   ;;  %v3013_v6 = vld [vmem:[#allocation8 + $0x100] ss:$8 sps:$4 sm:$0xff]   ;;  %v3018_v8 = vld [vmem:[#allocation8 + $0xf4] ss:$8 sps:$4 sm:$0xff]  }
  0xa0   : > { %881 = vmatpush1.bf16.msra.mxu1 %v2947_v25  ;;  %769 = vmatprep.subr.bf16.mxu0 %v2948_v26  ;;  %v2964_v7 = vld [vmem:[%s3575_s18 + $0x20] sm:$0xff]   ;;  %v3021_v9 = vld [vmem:[#allocation8 + $0x1f4] ss:$8 sps:$4 sm:$0xff]   ;;  %v3016_v10 = vld [vmem:[#allocation8 + $0xf0] ss:$8 sps:$4 sm:$0xff]   ;;  %s3250_s25 = scalar_lea.vmem %s2398_s15, 16 }
  0xa1   : > { %882 = vmatprep.subr.bf16.mxu1 %v2950_v27  ;;  %v3019_v11 = vld [vmem:[#allocation8 + $0x1f0] ss:$8 sps:$4 sm:$0xff]   ;;  %v3027_v13 = vld [vmem:[#allocation8 + $0x1e4] ss:$8 sps:$4 sm:$0xff]   ;;  %v3022_v14 = vld [vmem:[#allocation8 + $0xe0] ss:$8 sps:$4 sm:$0xff]   ;;  %p3251_p0 = scmp.ne.s32.totalorder %s2398_s15, %s3250_s25 }
  0xa2   : > { %v3025_v15 = vld [vmem:[#allocation8 + $0x1e0] ss:$8 sps:$4 sm:$0xff]   ;;  %v3030_v16 = vld [vmem:[#allocation8 + $0xd4] ss:$8 sps:$4 sm:$0xff]   ;;  %v3028_v19 = vld [vmem:[#allocation8 + $0xd0] ss:$8 sps:$4 sm:$0xff]  }
  0xa3   : > { %770 = vmatpush1.bf16.msra.mxu0 %v2952_v28  ;;  %v3033_v17 = vld [vmem:[#allocation8 + $0x1d4] ss:$8 sps:$4 sm:$0xff]   ;;  %v2965_v18 = vld [vmem:[%s3575_s18 + $0x28] sm:$0xff]   ;;  %v3031_v20 = vld [vmem:[#allocation8 + $0x1d0] ss:$8 sps:$4 sm:$0xff]   ;;  %p3950_p4 = scmp.ne.s32.totalorder %s3937_s26, 0 }
  0xa4   : > { %883 = vmatpush1.bf16.msra.mxu1 %v2953_v29  ;;  %771 = vmatprep.subr.bf16.mxu0 %v2954_v30  ;;  %v3036_v21 = vld [vmem:[#allocation8 + $0xc4] ss:$8 sps:$4 sm:$0xff]   ;;  %v3034_v23 = vld [vmem:[#allocation8 + $0xc0] ss:$8 sps:$4 sm:$0xff]   ;;  %v2966_v25 = vld [vmem:[%s3575_s18 + $0x30] sm:$0xff]   ;;  %s3343_s10 = smov [#allocation14]  }
  0xa5   : > { %884 = vmatprep.subr.bf16.mxu1 %v2956_v31  ;;  %v3039_v22 = vld [vmem:[#allocation8 + $0x1c4] ss:$8 sps:$4 sm:$0xff]   ;;  %v3037_v24 = vld [vmem:[#allocation8 + $0x1c0] ss:$8 sps:$4 sm:$0xff]   ;;  %v2967_v26 = vld [vmem:[%s3575_s18 + $0x38] sm:$0xff]   ;;  %s3869_s18 = scalar_lea.hbm %s3917_s11, %s2660_s14  ;;  %p3252_p2 = pnand %p3251_p0, %p3950_p4 }
  0xa6   : > { %v3042_v27 = vld [vmem:[#allocation8 + $0xb4] ss:$8 sps:$4 sm:$0xff]   ;;  %v3040_v29 = vld [vmem:[#allocation8 + $0xb0] ss:$8 sps:$4 sm:$0xff]   ;;  %v3048_v31 = vld [vmem:[#allocation8 + $0xa4] ss:$8 sps:$4 sm:$0xff]  }
  0xa7   : > { %772 = vmatpush1.bf16.msra.mxu0 %v2958_v32  ;;  %v3045_v28 = vld [vmem:[#allocation8 + $0x1b4] ss:$8 sps:$4 sm:$0xff]   ;;  %v3043_v30 = vld [vmem:[#allocation8 + $0x1b0] ss:$8 sps:$4 sm:$0xff]   ;;  %v3051_v32 = vld [vmem:[#allocation8 + $0x1a4] ss:$8 sps:$4 sm:$0xff]   ;;  %p3253_p5 = pneg %p3252_p2 }
  0xa8   : > { %885 = vmatpush1.bf16.msra.mxu1 %v2959_v33  ;;  %1539 = vmatprep.subr.bf16.mxu0 %v2970_v34  ;;  %v3046_v33 = vld [vmem:[#allocation8 + $0xa0] ss:$8 sps:$4 sm:$0xff]   ;;  %s3254_s30 = sshll.u32 %s3343_s10, 4  ;;  %s3255_s30 = int_to_ptr.vmem [resolvable:$false] %s3254_s30 }
  0xa9   : > { %1652 = vmatprep.subr.bf16.mxu1 %v2973_v36  ;;  %v3049_v34 = vld [vmem:[#allocation8 + $0x1a0] ss:$8 sps:$4 sm:$0xff]   ;;  %v3052_v36 = vld [vmem:[#allocation8 + $0x90] ss:$8 sps:$4 sm:$0xff]   ;;  %s3256_s24 = scalar_lea.vmem %s3255_s30, 32  ;;  %p3257_p7 = scmp.lt.s32.totalorder %s2398_s15, %s3255_s30 }
  0xaa   : > { %790 = vmatmul.mubr.bf16.vlgmr.msra.gmra.mxu0 %v2960_v35  ;;  %p3258_p10 = scmp.lt.s32.totalorder %s3256_s24, %s3250_s25 }
  0xab   : > { %903 = vmatmul.mubr.bf16.vlgmr.msra.gmra.mxu1 %v2960_v35  ;;  %799 = vmatprep.mubr.bf16.mxu0 %v3340_v1  ;;  %v3057_v35 = vld [vmem:[#allocation8 + $0x194] ss:$8 sps:$4 sm:$0xff]  }
  0xac   : > { %912 = vmatprep.mubr.bf16.mxu1 %v3340_v1  ;;  %1540 = vmatpush1.bf16.msra.mxu0 %v2968_v37  ;;  %v3055_v37 = vld [vmem:[#allocation8 + $0x190] ss:$8 sps:$4 sm:$0xff]   ;;  %p3259_p8 = por %p3258_p10, %p3257_p7 }
  0xad   : > { %1653 = vmatpush1.bf16.msra.mxu1 %v2971_v38  ;;  %1541 = vmatprep.subr.bf16.mxu0 %v2976_v39  ;;  %v3060_v38 = vld [vmem:[#allocation8 + $0x84] ss:$8 sps:$4 sm:$0xff]  }
  0xae   : > { %1654 = vmatprep.subr.bf16.mxu1 %v2979_v40  ;;  %v3063_v39 = vld [vmem:[#allocation8 + $0x184] ss:$8 sps:$4 sm:$0xff]   ;;  %v3058_v40 = vld [vmem:[#allocation8 + $0x80] ss:$8 sps:$4 sm:$0xff]   ;;  %p3260_p3 = pnand %p3259_p8, %p3253_p5 }
  0xb0   : > { %1542 = vmatpush1.bf16.msra.mxu0 %v2974_v41  ;;  %v3061_v41 = vld [vmem:[#allocation8 + $0x180] ss:$8 sps:$4 sm:$0xff]  }
  0xb1   : > { %1655 = vmatpush1.bf16.msra.mxu1 %v2977_v42  ;;  %1543 = vmatprep.subr.bf16.mxu0 %v2982_v43  ;;  %v3064_v42 = vld [vmem:[#allocation11 + $0x78] sm:$0xff]   ;;  %v529_v43 = vlaneseq }
  0xb2   : > { %1656 = vmatprep.subr.bf16.mxu1 %v2985_v44  ;;  %800 = vmatmul.mubr.bf16.gmra.mxu0 %v2961_v45 }
  0xb3   : > { %913 = vmatmul.mubr.bf16.gmra.mxu1 %v2961_v45  ;;  %809 = vmatprep.mubr.bf16.mxu0 %v3340_v1  ;;  %v3618_v44 = vshrl.u32 %v529_v43, 7 }
  0xb4   : > { %922 = vmatprep.mubr.bf16.mxu1 %v3340_v1  ;;  %1544 = vmatpush1.bf16.msra.mxu0 %v2980_v46 }
  0xb5   : > { %1657 = vmatpush1.bf16.msra.mxu1 %v2983_v47  ;;  %1545 = vmatprep.subr.bf16.mxu0 %v2988_v48  ;;  %v3621_v45 = vsub.s32 0, %v3618_v44  ;;  %v535_v46 = vsub.s32 1, %v3618_v44  ;;  %v527_v47 = vld [vmem:[%s3908_s2] sm:$0xf]  ;;  %v543_v48 = vsub.s32 3, %v3618_v44 }
  0xb6   : > { %1658 = vmatprep.subr.bf16.mxu1 %v2991_v49  ;;  %v539_v49 = vsub.s32 2, %v3618_v44 }
  0xb8   : > { %1546 = vmatpush1.bf16.msra.mxu0 %v2986_v50  ;;  %v3630_v50 = vrot.slane %v527_v47, %v3621_v45 }
  0xb9   : > { %1659 = vmatpush1.bf16.msra.mxu1 %v2989_v51  ;;  %1547 = vmatprep.subr.bf16.mxu0 %v2994_v52  ;;  %v3634_v51 = vrot.slane %v527_v47, %v535_v46 }
  0xba   : > { %1660 = vmatprep.subr.bf16.mxu1 %v2997_v53  ;;  %810 = vmatmul.mubr.bf16.gmra.mxu0 %v2962_v54 }
  0xbb   : > { %923 = vmatmul.mubr.bf16.gmra.mxu1 %v2962_v54  ;;  %819 = vmatprep.mubr.bf16.mxu0 %v3340_v1  ;;  %v3636_v54 = vrot.slane %v527_v47, %v543_v48  ;;  %v3066_v48 = vld [vmem:[#allocation11 + $0x70] sm:$0xff]  }
  0xbc   : > { %932 = vmatprep.mubr.bf16.mxu1 %v3340_v1  ;;  %1548 = vmatpush1.bf16.msra.mxu0 %v2992_v55  ;;  %v3638_v55 = vrot.slane %v527_v47, %v539_v49 }
  0xbd   : > { %1661 = vmatpush1.bf16.msra.mxu1 %v2995_v56  ;;  %1549 = vmatprep.subr.bf16.mxu0 %v3000_v57 }
  0xbe   : > { %1662 = vmatprep.subr.bf16.mxu1 %v3003_v58 }
  0xc0   : > { %1550 = vmatpush1.bf16.msra.mxu0 %v2998_v59 }
  0xc1   : > { %1663 = vmatpush1.bf16.msra.mxu1 %v3001_v60  ;;  %1551 = vmatprep.subr.bf16.mxu0 %v3006_v61 }
  0xc2   : > { %1664 = vmatprep.subr.bf16.mxu1 %v3009_v62  ;;  %820 = vmatmul.mubr.bf16.gmra.mxu0 %v2963_v63 }
  0xc3   : > { %933 = vmatmul.mubr.bf16.gmra.mxu1 %v2963_v63  ;;  %829 = vmatprep.mubr.bf16.mxu0 %v3340_v1 }
  0xc4   : > { %942 = vmatprep.mubr.bf16.mxu1 %v3340_v1  ;;  %1552 = vmatpush1.bf16.msra.mxu0 %v3004_v0 }
  0xc5   : > { %1665 = vmatpush1.bf16.msra.mxu1 %v3007_v2  ;;  %1553 = vmatprep.subr.bf16.mxu0 %v3012_v3 }
  0xc6   : > { %1666 = vmatprep.subr.bf16.mxu1 %v3015_v4 }
  0xc8   : > { %1554 = vmatpush1.bf16.msra.mxu0 %v3010_v5 }
  0xc9   : > { %1667 = vmatpush1.bf16.msra.mxu1 %v3013_v6  ;;  %1555 = vmatprep.subr.bf16.mxu0 %v3018_v8 }
  0xca   : > { %1668 = vmatprep.subr.bf16.mxu1 %v3021_v9  ;;  %830 = vmatmul.mubr.bf16.gmra.mxu0 %v2964_v7 }
  0xcb   : > { %943 = vmatmul.mubr.bf16.gmra.mxu1 %v2964_v7  ;;  %839 = vmatprep.mubr.bf16.mxu0 %v3340_v1 }
  0xcc   : > { %952 = vmatprep.mubr.bf16.mxu1 %v3340_v1  ;;  %1556 = vmatpush2.bf16.msra.mxu0 %v3016_v10 }
  0xcd   : > { %1669 = vmatpush2.bf16.msra.mxu1 %v3019_v11  ;;  %1557 = vmatprep.subr.bf16.mxu0 %v3024_v12 }
  0xce   : > { %1670 = vmatprep.subr.bf16.mxu1 %v3027_v13 }
  0xd0   : > { %1558 = vmatpush2.bf16.msra.mxu0 %v3022_v14 }
  0xd1   : > { %1671 = vmatpush2.bf16.msra.mxu1 %v3025_v15  ;;  %1559 = vmatprep.subr.bf16.mxu0 %v3030_v16 }
  0xd2   : > { %1672 = vmatprep.subr.bf16.mxu1 %v3033_v17  ;;  %840 = vmatmul.mubr.bf16.gmra.mxu0 %v2965_v18 }
  0xd3   : > { %953 = vmatmul.mubr.bf16.gmra.mxu1 %v2965_v18  ;;  %849 = vmatprep.mubr.bf16.mxu0 %v3340_v1 }
  0xd4   : > { %962 = vmatprep.mubr.bf16.mxu1 %v3340_v1  ;;  %1560 = vmatpush2.bf16.msra.mxu0 %v3028_v19 }
  0xd5   : > { %1673 = vmatpush2.bf16.msra.mxu1 %v3031_v20  ;;  %1561 = vmatprep.subr.bf16.mxu0 %v3036_v21 }
  0xd6   : > { %1674 = vmatprep.subr.bf16.mxu1 %v3039_v22 }
  0xd8   : > { %1562 = vmatpush2.bf16.msra.mxu0 %v3034_v23 }
  0xd9   : > { %1675 = vmatpush2.bf16.msra.mxu1 %v3037_v24  ;;  %1563 = vmatprep.subr.bf16.mxu0 %v3042_v27 }
  0xda   : > { %850 = vmatmul.mubr.bf16.gmra.mxu0 %v2966_v25  ;;  %1676 = vmatprep.subr.bf16.mxu1 %v3045_v28 }
  0xdb   : > { %963 = vmatmul.mubr.bf16.gmra.mxu1 %v2966_v25  ;;  %859 = vmatprep.mubr.bf16.mxu0 %v3340_v1 }
  0xdc   : > { %972 = vmatprep.mubr.bf16.mxu1 %v3340_v1  ;;  %1564 = vmatpush2.bf16.msra.mxu0 %v3040_v29  ;;  %v3054_v1 = vld [vmem:[#allocation8 + $0x94] ss:$8 sps:$4 sm:$0xff]  }
  0xdd   : > { %1677 = vmatpush2.bf16.msra.mxu1 %v3043_v30  ;;  %1565 = vmatprep.subr.bf16.mxu0 %v3048_v31 }
  0xde   : > { %1678 = vmatprep.subr.bf16.mxu1 %v3051_v32 }
  0xe0   : > { %1566 = vmatpush2.bf16.msra.mxu0 %v3046_v33 }
  0xe1   : > { %1679 = vmatpush2.bf16.msra.mxu1 %v3049_v34  ;;  %1567 = vmatprep.subr.bf16.mxu0 %v3054_v1 }
  0xe2   : > { %860 = vmatmul.mubr.bf16.gmra.mxu0 %v2967_v26  ;;  %1680 = vmatprep.subr.bf16.mxu1 %v3057_v35 }
  0xe3   : > { %973 = vmatmul.mubr.bf16.gmra.mxu1 %v2967_v26 }
  0xe4   : > { %1568 = vmatpush2.bf16.msra.mxu0 %v3052_v36 }
  0xe5   : > { %1681 = vmatpush2.bf16.msra.mxu1 %v3055_v37  ;;  %1569 = vmatprep.subr.bf16.mxu0 %v3060_v38 }
  0xe6   : > { %1682 = vmatprep.subr.bf16.mxu1 %v3063_v39 }
  0xe8   : > { %1570 = vmatpush2.bf16.msra.mxu0 %v3058_v40  ;;  %v3065_v40 = vld [vmem:[#allocation11 + $0x38] sm:$0xff]  }
  0xe9   : > { %1683 = vmatpush2.bf16.msra.mxu1 %v3061_v41  ;;  %2664 = vmatprep.subr.bf16.mxu0 %v3064_v42 }
 0x16a   : > { %v791_v52 = vpop.f32.mrf.mxu0 }
 0x16b   : > { %v904_v53 = vpop.f32.mrf.mxu1  ;;  %v792_v58 = vadd.f32 %v791_v52, %v3630_v50 }
 0x16c   : > { %v793_v56 = vpop.f32.mrf.mxu0  ;;  %v905_v63 = vadd.f32 %v904_v53, %v3638_v55 }
 0x16d   : > { %v906_v57 = vpop.f32.mrf.mxu1  ;;  %v794_v59 = vadd.f32 %v793_v56, %v3634_v51  ;;  %v983_v5 = vmul.f32 0.1, %v792_v58 }
 0x16e   : > { %v907_v60 = vadd.f32 %v906_v57, %v3636_v54  ;;  %v795_v61 = vpop.f32.mrf.mxu0  ;;  %v985_v14 = vmul.f32 0.1, %v905_v63 }
 0x16f   : > { %v908_v62 = vpop.f32.mrf.mxu1  ;;  %v796_v0 = vadd.f32 %v795_v61, %v3630_v50  ;;  %v984_v6 = vmul.f32 0.1, %v794_v59  ;;  %v1047_v21 = vmax.f32 %v792_v58, %v983_v5 }
 0x170   : > { %v909_v2 = vadd.f32 %v908_v62, %v3638_v55  ;;  %v797_v3 = vpop.f32.mrf.mxu0  ;;  %v986_v9 = vmul.f32 0.1, %v907_v60  ;;  %v1049_v31 = vmax.f32 %v905_v63, %v985_v14 }
 0x171   : > { %v910_v4 = vpop.f32.mrf.mxu1  ;;  %v798_v7 = vadd.f32 %v797_v3, %v3634_v51  ;;  %v987_v10 = vmul.f32 0.1, %v796_v0  ;;  %v1048_v25 = vmax.f32 %v794_v59, %v984_v6  ;;  %v3068_v6 = vld [vmem:[#allocation11 + $0x68] sm:$0xff]  }
 0x172   : > { %v911_v8 = vadd.f32 %v910_v4, %v3636_v54  ;;  %v989_v11 = vmul.f32 0.1, %v909_v2  ;;  %v801_v12 = vpop.f32.mrf.mxu0  ;;  %v1050_v26 = vmax.f32 %v907_v60, %v986_v9 }
 0x173   : > { %v914_v13 = vpop.f32.mrf.mxu1  ;;  %v988_v15 = vmul.f32 0.1, %v798_v7  ;;  %v1051_v17 = vmax.f32 %v796_v0, %v987_v10  ;;  %v3649_v18 = vadd.f32 %v801_v12, %v3630_v50  ;;  %v3067_v0 = vld [vmem:[#allocation11 + $0x30] sm:$0xff]  }
 0x174   : > { %v990_v16 = vmul.f32 0.1, %v911_v8  ;;  %v803_v19 = vpop.f32.mrf.mxu0  ;;  %v1053_v22 = vmax.f32 %v909_v2, %v989_v11  ;;  %v3654_v32 = vadd.f32 %v914_v13, %v3638_v55 }
 0x175   : > { %v916_v20 = vpop.f32.mrf.mxu1  ;;  %v1052_v23 = vmax.f32 %v798_v7, %v988_v15  ;;  %v804_v27 = vadd.f32 %v803_v19, %v3634_v51  ;;  %v1111_v1 = vpack.c.bf16 %v1051_v17, %v1047_v21  ;;  %v991_v35 = vmul.f32 0.1, %v3649_v18 }
 0x176   : > { %v1054_v24 = vmax.f32 %v911_v8, %v990_v16  ;;  %v917_v28 = vadd.f32 %v916_v20, %v3636_v54  ;;  %v805_v29 = vpop.f32.mrf.mxu0  ;;  %v1113_v41 = vpack.c.bf16 %v1053_v22, %v1049_v31  ;;  %v993_v60 = vmul.f32 0.1, %v3654_v32  ;;  %v3069_v22 = vld [vmem:[#allocation11 + $0x28] sm:$0xff]  }
 0x177   : > { %v918_v30 = vpop.f32.mrf.mxu1  ;;  %v806_v33 = vadd.f32 %v805_v29, %v3630_v50  ;;  %v1112_v38 = vpack.c.bf16 %v1052_v23, %v1048_v25  ;;  %v992_v49 = vmul.f32 0.1, %v804_v27  ;;  %v1055_v7 = vmax.f32 %v3649_v18, %v991_v35  ;;  %v3070_v23 = vld [vmem:[#allocation11 + $0x60] sm:$0xff]  }
 0x178   : > { %v3658_v34 = vadd.f32 %v918_v30, %v3638_v55  ;;  %v807_v36 = vpop.f32.mrf.mxu0  ;;  %v1114_v39 = vpack.c.bf16 %v1054_v24, %v1050_v26  ;;  %v994_v52 = vmul.f32 0.1, %v917_v28  ;;  %v1057_v17 = vmax.f32 %v3654_v32, %v993_v60 }
 0x179   : > { %v920_v37 = vpop.f32.mrf.mxu1  ;;  %v995_v42 = vmul.f32 0.1, %v806_v33  ;;  %v808_v43 = vadd.f32 %v807_v36, %v3634_v51  ;;  %1571 = vmatprep.mubr.bf16.mxu0 %v1112_v38  ;;  %v1056_v8 = vmax.f32 %v804_v27, %v992_v49 }
 0x17a   : > { %v921_v47 = vadd.f32 %v920_v37, %v3636_v54  ;;  %v997_v53 = vmul.f32 0.1, %v3658_v34  ;;  %1684 = vmatprep.mubr.bf16.mxu1 %v1114_v39  ;;  %v811_v56 = vpop.f32.mrf.mxu0  ;;  %1572 = vmatmul.mubr.bf16.vlgmr.msra.gmra.mxu0 %v1111_v1  ;;  %v1058_v9 = vmax.f32 %v917_v28, %v994_v52 }
 0x17b   : > { %v924_v57 = vpop.f32.mrf.mxu1  ;;  %v996_v58 = vmul.f32 0.1, %v808_v43  ;;  %1685 = vmatmul.mubr.bf16.vlgmr.msra.gmra.mxu1 %v1113_v41  ;;  %v1059_v61 = vmax.f32 %v806_v33, %v995_v42  ;;  %2665 = vmatpush3.bf16.msra.mxu0 %v3065_v40  ;;  %v3674_v13 = vadd.f32 %v811_v56, %v3630_v50  ;;  %v3071_v40 = vld [vmem:[#allocation11 + $0x20] sm:$0xff]  }
 0x17c   : > { %v998_v59 = vmul.f32 0.1, %v921_v47  ;;  %v813_v62 = vpop.f32.mrf.mxu0  ;;  %2666 = vmatprep.subr.bf16.mxu0 %v3066_v48  ;;  %v1061_v10 = vmax.f32 %v3658_v34, %v997_v53  ;;  %v3677_v14 = vadd.f32 %v924_v57, %v3638_v55  ;;  %v3072_v48 = vld [vmem:[#allocation11 + $0x58] sm:$0xff]  }
 0x17d   : > { %v926_v63 = vpop.f32.mrf.mxu1  ;;  %v1060_v2 = vmax.f32 %v808_v43, %v996_v58  ;;  %v3666_v4 = vadd.f32 %v813_v62, %v3634_v51  ;;  %v1115_v27 = vpack.c.bf16 %v1059_v61, %v1055_v7  ;;  %v999_v34 = vmul.f32 0.1, %v3674_v13 }
 0x17e   : > { %v1062_v3 = vmax.f32 %v921_v47, %v998_v59  ;;  %v3669_v5 = vadd.f32 %v926_v63, %v3636_v54  ;;  %v815_v11 = vpop.f32.mrf.mxu0  ;;  %v1117_v33 = vpack.c.bf16 %v1061_v10, %v1057_v17  ;;  %v1001_v1 = vmul.f32 0.1, %v3677_v14 }
 0x17f   : > { %v928_v12 = vpop.f32.mrf.mxu1  ;;  %v816_v15 = vadd.f32 %v815_v11, %v3630_v50  ;;  %v1116_v20 = vpack.c.bf16 %v1060_v2, %v1056_v8  ;;  %2667 = vmatpush3.bf16.msra.mxu0 %v3067_v0  ;;  %v1000_v24 = vmul.f32 0.1, %v3666_v4  ;;  %v1063_v59 = vmax.f32 %v3674_v13, %v999_v34  ;;  %v3074_v11 = vld [vmem:[#allocation11 + $0x50] sm:$0xff]  }
 0x180   : > { %v3681_v16 = vadd.f32 %v928_v12, %v3638_v55  ;;  %v817_v18 = vpop.f32.mrf.mxu0  ;;  %v1118_v21 = vpack.c.bf16 %v1062_v3, %v1058_v9  ;;  %v1002_v25 = vmul.f32 0.1, %v3669_v5  ;;  %2668 = vmatprep.subr.bf16.mxu0 %v3068_v6  ;;  %v1065_v60 = vmax.f32 %v3677_v14, %v1001_v1  ;;  %v3073_v6 = vld [vmem:[#allocation11 + $0x18] sm:$0xff]  }
 0x181   : > { %v930_v19 = vpop.f32.mrf.mxu1  ;;  %v1003_v26 = vmul.f32 0.1, %v816_v15  ;;  %v818_v29 = vadd.f32 %v817_v18, %v3634_v51  ;;  %1581 = vmatprep.mubr.bf16.mxu0 %v1116_v20  ;;  %v1064_v41 = vmax.f32 %v3666_v4, %v1000_v24  ;;  %v3075_v24 = vld [vmem:[#allocation11 + $0x10] sm:$0xff]  }
 0x182   : > { %v1005_v28 = vmul.f32 0.1, %v3681_v16  ;;  %v931_v30 = vadd.f32 %v930_v19, %v3636_v54  ;;  %1694 = vmatprep.mubr.bf16.mxu1 %v1118_v21  ;;  %v821_v31 = vpop.f32.mrf.mxu0  ;;  %1582 = vmatmul.mubr.bf16.gmra.mxu0 %v1115_v27  ;;  %v1066_v42 = vmax.f32 %v3669_v5, %v1002_v25 }
 0x183   : > { %v934_v32 = vpop.f32.mrf.mxu1  ;;  %v3692_v35 = vadd.f32 %v821_v31, %v3630_v50  ;;  %v1004_v36 = vmul.f32 0.1, %v818_v29  ;;  %1695 = vmatmul.mubr.bf16.gmra.mxu1 %v1117_v33  ;;  %2669 = vmatpush3.bf16.msra.mxu0 %v3069_v22  ;;  %v1067_v43 = vmax.f32 %v816_v15, %v1003_v26 }
 0x184   : > { %v1006_v37 = vmul.f32 0.1, %v931_v30  ;;  %v823_v38 = vpop.f32.mrf.mxu0  ;;  %2670 = vmatprep.subr.bf16.mxu0 %v3070_v23  ;;  %v1069_v49 = vmax.f32 %v3681_v16, %v1005_v28  ;;  %v3705_v62 = vadd.f32 %v934_v32, %v3638_v55 }
 0x185   : > { %v936_v39 = vpop.f32.mrf.mxu1  ;;  %v3697_v47 = vadd.f32 %v823_v38, %v3634_v51  ;;  %v1068_v52 = vmax.f32 %v818_v29, %v1004_v36  ;;  %v1007_v61 = vmul.f32 0.1, %v3692_v35  ;;  %v1119_v10 = vpack.c.bf16 %v1067_v43, %v1063_v59 }
 0x186   : > { %v1070_v53 = vmax.f32 %v931_v30, %v1006_v37  ;;  %v937_v56 = vadd.f32 %v936_v39, %v3636_v54  ;;  %v825_v57 = vpop.f32.mrf.mxu0  ;;  %v1121_v17 = vpack.c.bf16 %v1069_v49, %v1065_v60  ;;  %v1009_v18 = vmul.f32 0.1, %v3705_v62 }
 0x187   : > { %v938_v58 = vpop.f32.mrf.mxu1  ;;  %v826_v63 = vadd.f32 %v825_v57, %v3630_v50  ;;  %v1120_v4 = vpack.c.bf16 %v1068_v52, %v1064_v41  ;;  %2671 = vmatpush3.bf16.msra.mxu0 %v3071_v40  ;;  %v1008_v7 = vmul.f32 0.1, %v3697_v47  ;;  %v1071_v1 = vmax.f32 %v3692_v35, %v1007_v61 }
 0x188   : > { %v3709_v0 = vadd.f32 %v938_v58, %v3638_v55  ;;  %v827_v2 = vpop.f32.mrf.mxu0  ;;  %v1122_v5 = vpack.c.bf16 %v1070_v53, %v1066_v42  ;;  %2672 = vmatprep.subr.bf16.mxu0 %v3072_v48  ;;  %v1010_v12 = vmul.f32 0.1, %v937_v56  ;;  %v1073_v36 = vmax.f32 %v3705_v62, %v1009_v18 }
 0x189   : > { %v940_v3 = vpop.f32.mrf.mxu1  ;;  %v828_v8 = vadd.f32 %v827_v2, %v3634_v51  ;;  %v1011_v13 = vmul.f32 0.1, %v826_v63  ;;  %1591 = vmatprep.mubr.bf16.mxu0 %v1120_v4  ;;  %v1072_v25 = vmax.f32 %v3697_v47, %v1008_v7 }
 0x18a   : > { %v941_v9 = vadd.f32 %v940_v3, %v3636_v54  ;;  %v1013_v14 = vmul.f32 0.1, %v3709_v0  ;;  %1704 = vmatprep.mubr.bf16.mxu1 %v1122_v5  ;;  %v831_v15 = vpop.f32.mrf.mxu0  ;;  %1592 = vmatmul.mubr.bf16.gmra.mxu0 %v1119_v10  ;;  %v1074_v29 = vmax.f32 %v937_v56, %v1010_v12 }
 0x18b   : > { %v944_v16 = vpop.f32.mrf.mxu1  ;;  %v1012_v19 = vmul.f32 0.1, %v828_v8  ;;  %v3717_v21 = vadd.f32 %v831_v15, %v3630_v50  ;;  %1705 = vmatmul.mubr.bf16.gmra.mxu1 %v1121_v17  ;;  %2673 = vmatpush3.bf16.msra.mxu0 %v3073_v6  ;;  %v1075_v26 = vmax.f32 %v826_v63, %v1011_v13 }
 0x18c   : > { %v1014_v20 = vmul.f32 0.1, %v941_v9  ;;  %v833_v22 = vpop.f32.mrf.mxu0  ;;  %2674 = vmatprep.subr.bf16.mxu0 %v3074_v11  ;;  %v1077_v30 = vmax.f32 %v3709_v0, %v1013_v14  ;;  %v945_v40 = vadd.f32 %v944_v16, %v3638_v55 }
 0x18d   : > { %v946_v23 = vpop.f32.mrf.mxu1  ;;  %v1076_v27 = vmax.f32 %v828_v8, %v1012_v19  ;;  %v834_v31 = vadd.f32 %v833_v22, %v3634_v51  ;;  %v1015_v39 = vmul.f32 0.1, %v3717_v21  ;;  %v1123_v52 = vpack.c.bf16 %v1075_v26, %v1071_v1 }
 0x18e   : > { %v1078_v28 = vmax.f32 %v941_v9, %v1014_v20  ;;  %v947_v32 = vadd.f32 %v946_v23, %v3636_v54  ;;  %v835_v33 = vpop.f32.mrf.mxu0  ;;  %v1125_v60 = vpack.c.bf16 %v1077_v30, %v1073_v36  ;;  %v1017_v63 = vmul.f32 0.1, %v945_v40 }
 0x18f   : > { %v948_v34 = vpop.f32.mrf.mxu1  ;;  %v836_v37 = vadd.f32 %v835_v33, %v3630_v50  ;;  %v1124_v43 = vpack.c.bf16 %v1076_v27, %v1072_v25  ;;  %2675 = vmatpush3.bf16.msra.mxu0 %v3075_v24  ;;  %v1016_v53 = vmul.f32 0.1, %v834_v31  ;;  %v1079_v8 = vmax.f32 %v3717_v21, %v1015_v39 }
 0x190   : > { %v949_v38 = vadd.f32 %v948_v34, %v3638_v55  ;;  %v837_v41 = vpop.f32.mrf.mxu0  ;;  %v1126_v47 = vpack.c.bf16 %v1078_v28, %v1074_v29  ;;  %v1018_v56 = vmul.f32 0.1, %v947_v32  ;;  %v1081_v18 = vmax.f32 %v945_v40, %v1017_v63 }
 0x191   : > { %v950_v42 = vpop.f32.mrf.mxu1  ;;  %v1019_v48 = vmul.f32 0.1, %v836_v37  ;;  %v838_v49 = vadd.f32 %v837_v41, %v3634_v51  ;;  %1601 = vmatprep.mubr.bf16.mxu0 %v1124_v43  ;;  %v1080_v9 = vmax.f32 %v834_v31, %v1016_v53 }
 0x192   : > { %v951_v35 = vadd.f32 %v950_v42, %v3636_v54  ;;  %v1021_v57 = vmul.f32 0.1, %v949_v38  ;;  %1714 = vmatprep.mubr.bf16.mxu1 %v1126_v47  ;;  %v841_v58 = vpop.f32.mrf.mxu0  ;;  %1602 = vmatmul.mubr.bf16.gmra.mxu0 %v1123_v52  ;;  %v1082_v10 = vmax.f32 %v947_v32, %v1018_v56 }
 0x193   : > { %v954_v59 = vpop.f32.mrf.mxu1  ;;  %v1020_v61 = vmul.f32 0.1, %v838_v49  ;;  %v1083_v0 = vmax.f32 %v836_v37, %v1019_v48  ;;  %1715 = vmatmul.mubr.bf16.gmra.mxu1 %v1125_v60  ;;  %v842_v14 = vadd.f32 %v841_v58, %v3630_v50 }
 0x194   : > { %v1022_v62 = vmul.f32 0.1, %v951_v35  ;;  %v843_v2 = vpop.f32.mrf.mxu0  ;;  %v1085_v11 = vmax.f32 %v949_v38, %v1021_v57  ;;  %v955_v15 = vadd.f32 %v954_v59, %v3638_v55 }
 0x195   : > { %v956_v3 = vpop.f32.mrf.mxu1  ;;  %v1084_v4 = vmax.f32 %v838_v49, %v1020_v61  ;;  %v844_v6 = vadd.f32 %v843_v2, %v3634_v51  ;;  %v1127_v26 = vpack.c.bf16 %v1083_v0, %v1079_v8  ;;  %v1023_v33 = vmul.f32 0.1, %v842_v14 }
 0x196   : > { %v1086_v5 = vmax.f32 %v951_v35, %v1022_v62  ;;  %v957_v7 = vadd.f32 %v956_v3, %v3636_v54  ;;  %v845_v12 = vpop.f32.mrf.mxu0  ;;  %v1129_v32 = vpack.c.bf16 %v1085_v11, %v1081_v18  ;;  %v1025_v34 = vmul.f32 0.1, %v955_v15 }
 0x197   : > { %v958_v13 = vpop.f32.mrf.mxu1  ;;  %v846_v16 = vadd.f32 %v845_v12, %v3630_v50  ;;  %v1128_v22 = vpack.c.bf16 %v1084_v4, %v1080_v9  ;;  %v1024_v24 = vmul.f32 0.1, %v844_v6  ;;  %v1087_v57 = vmax.f32 %v842_v14, %v1023_v33 }
 0x198   : > { %v959_v17 = vadd.f32 %v958_v13, %v3638_v55  ;;  %v847_v19 = vpop.f32.mrf.mxu0  ;;  %v1130_v23 = vpack.c.bf16 %v1086_v5, %v1082_v10  ;;  %v1026_v21 = vmul.f32 0.1, %v957_v7  ;;  %v1089_v58 = vmax.f32 %v955_v15, %v1025_v34 }
 0x199   : > { %v960_v20 = vpop.f32.mrf.mxu1  ;;  %v1027_v25 = vmul.f32 0.1, %v846_v16  ;;  %v848_v28 = vadd.f32 %v847_v19, %v3634_v51  ;;  %1611 = vmatprep.mubr.bf16.mxu0 %v1128_v22  ;;  %v1088_v41 = vmax.f32 %v844_v6, %v1024_v24 }
 0x19a   : > { %v1029_v27 = vmul.f32 0.1, %v959_v17  ;;  %v961_v29 = vadd.f32 %v960_v20, %v3636_v54  ;;  %1724 = vmatprep.mubr.bf16.mxu1 %v1130_v23  ;;  %v851_v30 = vpop.f32.mrf.mxu0  ;;  %1612 = vmatmul.mubr.bf16.gmra.mxu0 %v1127_v26  ;;  %v1090_v42 = vmax.f32 %v957_v7, %v1026_v21 }
 0x19b   : > { %v964_v31 = vpop.f32.mrf.mxu1  ;;  %v3741_v1 = vadd.f32 %v851_v30, %v3630_v50  ;;  %v1028_v37 = vmul.f32 0.1, %v848_v28  ;;  %1725 = vmatmul.mubr.bf16.gmra.mxu1 %v1129_v32  ;;  %v1091_v43 = vmax.f32 %v846_v16, %v1027_v25 }
 0x19c   : > { %v3744_v36 = vadd.f32 %v964_v31, %v3638_v55  ;;  %v1030_v38 = vmul.f32 0.1, %v961_v29  ;;  %v853_v39 = vpop.f32.mrf.mxu0  ;;  %v1093_v48 = vmax.f32 %v959_v17, %v1029_v27 }
 0x19d   : > { %v966_v40 = vpop.f32.mrf.mxu1  ;;  %v854_v47 = vadd.f32 %v853_v39, %v3634_v51  ;;  %v1092_v49 = vmax.f32 %v848_v28, %v1028_v37  ;;  %v1031_v59 = vmul.f32 0.1, %v3741_v1  ;;  %v1131_v7 = vpack.c.bf16 %v1091_v43, %v1087_v57 }
 0x19e   : > { %v1094_v35 = vmax.f32 %v961_v29, %v1030_v38  ;;  %v967_v52 = vadd.f32 %v966_v40, %v3636_v54  ;;  %v855_v53 = vpop.f32.mrf.mxu0  ;;  %v1033_v60 = vmul.f32 0.1, %v3744_v36  ;;  %v1133_v13 = vpack.c.bf16 %v1093_v48, %v1089_v58 }
 0x19f   : > { %v968_v56 = vpop.f32.mrf.mxu1  ;;  %v856_v61 = vadd.f32 %v855_v53, %v3630_v50  ;;  %v1132_v2 = vpack.c.bf16 %v1092_v49, %v1088_v41  ;;  %v1032_v4 = vmul.f32 0.1, %v854_v47  ;;  %v1095_v16 = vmax.f32 %v3741_v1, %v1031_v59 }
 0x1a0   : > { %v969_v62 = vadd.f32 %v968_v56, %v3638_v55  ;;  %v857_v63 = vpop.f32.mrf.mxu0  ;;  %v1134_v3 = vpack.c.bf16 %v1094_v35, %v1090_v42  ;;  %v1034_v8 = vmul.f32 0.1, %v967_v52  ;;  %v1097_v20 = vmax.f32 %v3744_v36, %v1033_v60 }
 0x1a1   : > { %v970_v0 = vpop.f32.mrf.mxu1  ;;  %v858_v5 = vadd.f32 %v857_v63, %v3634_v51  ;;  %v1035_v9 = vmul.f32 0.1, %v856_v61  ;;  %1621 = vmatprep.mubr.bf16.mxu0 %v1132_v2  ;;  %v1096_v22 = vmax.f32 %v854_v47, %v1032_v4  ;;  %v3077_v2 = vld [vmem:[#allocation11 + $0x8] sm:$0xff]   ;;  %v3079_v4 = vld [vmem:[#allocation11] sm:$0xff]  }
 0x1a2   : > { %v971_v6 = vadd.f32 %v970_v0, %v3636_v54  ;;  %v1037_v10 = vmul.f32 0.1, %v969_v62  ;;  %1734 = vmatprep.mubr.bf16.mxu1 %v1134_v3  ;;  %v861_v11 = vpop.f32.mrf.mxu0  ;;  %1622 = vmatmul.mubr.bf16.gmra.mxu0 %v1131_v7  ;;  %v1098_v21 = vmax.f32 %v967_v52, %v1034_v8  ;;  %v3076_v0 = vld [vmem:[#allocation11 + $0x48] sm:$0xff]   ;;  %v3078_v3 = vld [vmem:[#allocation11 + $0x40] sm:$0xff]   ;;  %v1207_v7 = vld [vmem:[#allocation9] sm:$0x3] }
 0x1a3   : > { %v974_v12 = vpop.f32.mrf.mxu1  ;;  %v1036_v14 = vmul.f32 0.1, %v858_v5  ;;  %v1099_v17 = vmax.f32 %v856_v61, %v1035_v9  ;;  %1735 = vmatmul.mubr.bf16.gmra.mxu1 %v1133_v13  ;;  %v862_v30 = vadd.f32 %v861_v11, %v3630_v50  ;;  %2676 = vmatprep.subr.bf16.mxu0 %v3076_v0  ;;  %v3765_v8 = vrot.slane %v1207_v7, %v3621_v45 }
 0x1a4   : > { %v1038_v15 = vmul.f32 0.1, %v971_v6  ;;  %v863_v18 = vpop.f32.mrf.mxu0  ;;  %v1101_v25 = vmax.f32 %v969_v62, %v1037_v10  ;;  %v975_v31 = vadd.f32 %v974_v12, %v3638_v55  ;;  %2677 = vmatpush3.bf16.msra.mxu0 %v3077_v2  ;;  %v3769_v9 = vrot.slane %v1207_v7, %v535_v46 }
 0x1a5   : > { %v976_v19 = vpop.f32.mrf.mxu1  ;;  %v1100_v23 = vmax.f32 %v858_v5, %v1036_v14  ;;  %v864_v26 = vadd.f32 %v863_v18, %v3634_v51  ;;  %v1135_v39 = vpack.c.bf16 %v1099_v17, %v1095_v16  ;;  %v1039_v49 = vmul.f32 0.1, %v862_v30  ;;  %2678 = vmatprep.subr.bf16.mxu0 %v3078_v3  ;;  %v3080_v5 = vld [vmem:[#allocation12 + $0x38] sm:$0xff]  }
 0x1a6   : > { %v1102_v24 = vmax.f32 %v971_v6, %v1038_v15  ;;  %v977_v27 = vadd.f32 %v976_v19, %v3636_v54  ;;  %v865_v28 = vpop.f32.mrf.mxu0  ;;  %v1137_v48 = vpack.c.bf16 %v1101_v25, %v1097_v20  ;;  %v3081_v6 = vld [vmem:[#allocation12 + $0x30] sm:$0xff]   ;;  %2753 = vmatprep.subr.bf16.mxu1 %v3080_v5 }
 0x1a7   : > { %v978_v29 = vpop.f32.mrf.mxu1  ;;  %v866_v32 = vadd.f32 %v865_v28, %v3630_v50  ;;  %v1040_v34 = vmul.f32 0.1, %v864_v26  ;;  %v1136_v37 = vpack.c.bf16 %v1100_v23, %v1096_v22  ;;  %v1103_v60 = vmax.f32 %v862_v30, %v1039_v49  ;;  %2754 = vmatpush3.bf16.msra.mxu1 %v3080_v5 }
 0x1a8   : > { %v979_v33 = vadd.f32 %v978_v29, %v3638_v55  ;;  %v867_v1 = vpop.f32.mrf.mxu0  ;;  %v1138_v38 = vpack.c.bf16 %v1102_v24, %v1098_v21  ;;  %v1042_v40 = vmul.f32 0.1, %v977_v27  ;;  %v1041_v55 = vmul.f32 0.1, %v975_v31  ;;  %2679 = vmatpush3.bf16.msra.mxu0 %v3079_v4  ;;  %2755 = vmatprep.subr.bf16.mxu1 %v3081_v6 }
 0x1a9   : > { %v980_v36 = vpop.f32.mrf.mxu1  ;;  %v1043_v41 = vmul.f32 0.1, %v866_v32  ;;  %v868_v42 = vadd.f32 %v867_v1, %v3634_v51  ;;  %1631 = vmatprep.mubr.bf16.mxu0 %v1136_v37  ;;  %v1104_v52 = vmax.f32 %v864_v26, %v1040_v34 }
 0x1aa   : > { %v981_v43 = vadd.f32 %v980_v36, %v3636_v54  ;;  %v1045_v47 = vmul.f32 0.1, %v979_v33  ;;  %1744 = vmatprep.mubr.bf16.mxu1 %v1138_v38  ;;  %1632 = vmatmul.mubr.bf16.gmra.mxu0 %v1135_v39  ;;  %v1106_v53 = vmax.f32 %v977_v27, %v1042_v40  ;;  %v1105_v54 = vmax.f32 %v975_v31, %v1041_v55 }
 0x1ab   : > { %v1044_v50 = vmul.f32 0.1, %v868_v42  ;;  %1745 = vmatmul.mubr.bf16.gmra.mxu1 %v1137_v48  ;;  %v1107_v56 = vmax.f32 %v866_v32, %v1043_v41 }
 0x1ac   : > { %v1046_v35 = vmul.f32 0.1, %v981_v43  ;;  %v1109_v59 = vmax.f32 %v979_v33, %v1045_v47  ;;  %2756 = vmatpush3.bf16.msra.mxu1 %v3081_v6 }
 0x1ad   : > { %v1108_v57 = vmax.f32 %v868_v42, %v1044_v50  ;;  %v1139_v62 = vpack.c.bf16 %v1107_v56, %v1103_v60 }
 0x1ae   : > { %v1110_v58 = vmax.f32 %v981_v43, %v1046_v35  ;;  %v1141_v63 = vpack.c.bf16 %v1109_v59, %v1105_v54 }
 0x1af   : > { %v1140_v51 = vpack.c.bf16 %v1108_v57, %v1104_v52 }
 0x1b0   : > { %v1142_v61 = vpack.c.bf16 %v1110_v58, %v1106_v53 }
 0x1b1   : > { %1641 = vmatprep.mubr.bf16.mxu0 %v1140_v51 }
 0x1b2   : > { %1754 = vmatprep.mubr.bf16.mxu1 %v1142_v61  ;;  %1642 = vmatmul.mubr.bf16.gmra.mxu0 %v1139_v62 }
 0x1b3   : > { %1755 = vmatmul.mubr.bf16.gmra.mxu1 %v1141_v63 }
 0x23a   : > { %v1573_v10 = vpop.f32.mrf.mxu0 }
 0x23b   : > { %v1686_v11 = vpop.f32.mrf.mxu1  ;;  %v1574_v12 = vadd.f32 %v1573_v10, %v3765_v8 }
 0x23c   : > { %v1575_v13 = vpop.f32.mrf.mxu0 }
 0x23d   : > { %v1688_v14 = vpop.f32.mrf.mxu1  ;;  %v1576_v15 = vadd.f32 %v1575_v13, %v3769_v9  ;;  %v1687_v20 = vadd.f32 %v1686_v11, %v1574_v12 }
 0x23e   : > { %v1577_v16 = vpop.f32.mrf.mxu0 }
 0x23f   : > { %v1690_v17 = vpop.f32.mrf.mxu1  ;;  %v1689_v18 = vadd.f32 %v1688_v14, %v1576_v15  ;;  %v1578_v19 = vadd.f32 %v1577_v16, %v3765_v8  ;;  %v1765_v28 = vmul.f32 0.1, %v1687_v20 }
 0x240   : > { %v1579_v22 = vpop.f32.mrf.mxu0 }
 0x241   : > { %v1692_v23 = vpop.f32.mrf.mxu1  ;;  %v1691_v24 = vadd.f32 %v1690_v17, %v1578_v19  ;;  %v1580_v44 = vadd.f32 %v1579_v22, %v3769_v9  ;;  %v1766_v21 = vmul.f32 0.1, %v1689_v18  ;;  %v1797_v39 = vmax.f32 %v1687_v20, %v1765_v28 }
 0x242   : > { %v1583_v46 = vpop.f32.mrf.mxu0 }
 0x243   : > { %v1767_v25 = vmul.f32 0.1, %v1691_v24  ;;  %v1693_v26 = vadd.f32 %v1692_v23, %v1580_v44  ;;  %v1696_v27 = vpop.f32.mrf.mxu1  ;;  %v1584_v31 = vadd.f32 %v1583_v46, %v3765_v8  ;;  %v1798_v36 = vmax.f32 %v1689_v18, %v1766_v21 }
 0x244   : > { %v1585_v29 = vpop.f32.mrf.mxu0 }
 0x245   : > { %v1768_v30 = vmul.f32 0.1, %v1693_v26  ;;  %v1586_v32 = vadd.f32 %v1585_v29, %v3769_v9  ;;  %v1698_v33 = vpop.f32.mrf.mxu1  ;;  %v1799_v34 = vmax.f32 %v1691_v24, %v1767_v25  ;;  %v1697_v43 = vadd.f32 %v1696_v27, %v1584_v31 }
 0x246   : > { %v1587_v1 = vpop.f32.mrf.mxu0 }
 0x247   : > { %v1800_v37 = vmax.f32 %v1693_v26, %v1768_v30  ;;  %v1700_v38 = vpop.f32.mrf.mxu1  ;;  %v1699_v40 = vadd.f32 %v1698_v33, %v1586_v32  ;;  %v1588_v41 = vadd.f32 %v1587_v1, %v3765_v8  ;;  %v1829_v50 = vpack.c.bf16 %v1799_v34, %v1797_v39 }
 0x248   : > { %v1589_v42 = vpop.f32.mrf.mxu0  ;;  %v1769_v59 = vmul.f32 0.1, %v1697_v43 }
 0x249   : > { %v1590_v47 = vadd.f32 %v1589_v42, %v3769_v9  ;;  %v1702_v48 = vpop.f32.mrf.mxu1  ;;  %v1830_v49 = vpack.c.bf16 %v1800_v37, %v1798_v36  ;;  %v1701_v35 = vadd.f32 %v1700_v38, %v1588_v41  ;;  %v1770_v56 = vmul.f32 0.1, %v1699_v40 }
 0x24a   : > { %v1593_v55 = vpop.f32.mrf.mxu0  ;;  %v1801_v7 = vmax.f32 %v1697_v43, %v1769_v59 }
 0x24b   : > { %v1703_v52 = vadd.f32 %v1702_v48, %v1590_v47  ;;  %v1706_v53 = vpop.f32.mrf.mxu1  ;;  %2012 = vmatprep.mubr.bf16.mxu0 %v1830_v49  ;;  %v1771_v57 = vmul.f32 0.1, %v1701_v35  ;;  %v1594_v51 = vadd.f32 %v1593_v55, %v3765_v8  ;;  %v1802_v4 = vmax.f32 %v1699_v40, %v1770_v56 }
 0x24c   : > { %v1595_v58 = vpop.f32.mrf.mxu0  ;;  %2013 = vmatmul.mubr.bf16.vlgmr.msra.gmra.mxu0 %v1829_v50 }
 0x24d   : > { %v1772_v60 = vmul.f32 0.1, %v1703_v52  ;;  %v1596_v61 = vadd.f32 %v1595_v58, %v3769_v9  ;;  %v1708_v54 = vpop.f32.mrf.mxu1  ;;  %v1803_v63 = vmax.f32 %v1701_v35, %v1771_v57  ;;  %v1707_v10 = vadd.f32 %v1706_v53, %v1594_v51 }
 0x24e   : > { %v1597_v62 = vpop.f32.mrf.mxu0 }
 0x24f   : > { %v1804_v0 = vmax.f32 %v1703_v52, %v1772_v60  ;;  %v1598_v2 = vadd.f32 %v1597_v62, %v3765_v8  ;;  %v1710_v3 = vpop.f32.mrf.mxu1  ;;  %v1709_v5 = vadd.f32 %v1708_v54, %v1596_v61  ;;  %v1831_v19 = vpack.c.bf16 %v1803_v63, %v1801_v7 }
 0x250   : > { %v1599_v6 = vpop.f32.mrf.mxu0  ;;  %v1773_v23 = vmul.f32 0.1, %v1707_v10 }
 0x251   : > { %v1711_v11 = vadd.f32 %v1710_v3, %v1598_v2  ;;  %v1600_v12 = vadd.f32 %v1599_v6, %v3769_v9  ;;  %v1712_v13 = vpop.f32.mrf.mxu1  ;;  %v1832_v15 = vpack.c.bf16 %v1804_v0, %v1802_v4  ;;  %v1774_v20 = vmul.f32 0.1, %v1709_v5 }
 0x252   : > { %v1603_v14 = vpop.f32.mrf.mxu0  ;;  %v1805_v33 = vmax.f32 %v1707_v10, %v1773_v23 }
 0x253   : > { %v1775_v16 = vmul.f32 0.1, %v1711_v11  ;;  %v1713_v17 = vadd.f32 %v1712_v13, %v1600_v12  ;;  %v1716_v18 = vpop.f32.mrf.mxu1  ;;  %2020 = vmatprep.mubr.bf16.mxu0 %v1832_v15  ;;  %v1604_v44 = vadd.f32 %v1603_v14, %v3765_v8  ;;  %v1806_v30 = vmax.f32 %v1709_v5, %v1774_v20 }
 0x254   : > { %v1605_v22 = vpop.f32.mrf.mxu0  ;;  %2021 = vmatmul.mubr.bf16.gmra.mxu0 %v1831_v19 }
 0x255   : > { %v1776_v24 = vmul.f32 0.1, %v1713_v17  ;;  %v1606_v46 = vadd.f32 %v1605_v22, %v3769_v9  ;;  %v1718_v21 = vpop.f32.mrf.mxu1  ;;  %v1807_v26 = vmax.f32 %v1711_v11, %v1775_v16  ;;  %v1717_v34 = vadd.f32 %v1716_v18, %v1604_v44 }
 0x256   : > { %v1607_v25 = vpop.f32.mrf.mxu0 }
 0x257   : > { %v1808_v27 = vmax.f32 %v1713_v17, %v1776_v24  ;;  %v1608_v28 = vadd.f32 %v1607_v25, %v3765_v8  ;;  %v1720_v29 = vpop.f32.mrf.mxu1  ;;  %v1719_v31 = vadd.f32 %v1718_v21, %v1606_v46  ;;  %v1833_v43 = vpack.c.bf16 %v1807_v26, %v1805_v33 }
 0x258   : > { %v1609_v32 = vpop.f32.mrf.mxu0  ;;  %v1777_v49 = vmul.f32 0.1, %v1717_v34 }
 0x259   : > { %v1721_v1 = vadd.f32 %v1720_v29, %v1608_v28  ;;  %v1610_v36 = vadd.f32 %v1609_v32, %v3769_v9  ;;  %v1722_v37 = vpop.f32.mrf.mxu1  ;;  %v1834_v39 = vpack.c.bf16 %v1808_v27, %v1806_v30  ;;  %v1778_v47 = vmul.f32 0.1, %v1719_v31 }
 0x25a   : > { %v1613_v38 = vpop.f32.mrf.mxu0  ;;  %v1809_v54 = vmax.f32 %v1717_v34, %v1777_v49 }
 0x25b   : > { %v1779_v40 = vmul.f32 0.1, %v1721_v1  ;;  %v1723_v41 = vadd.f32 %v1722_v37, %v1610_v36  ;;  %v1726_v42 = vpop.f32.mrf.mxu1  ;;  %2028 = vmatprep.mubr.bf16.mxu0 %v1834_v39  ;;  %v1614_v35 = vadd.f32 %v1613_v38, %v3765_v8  ;;  %v1810_v60 = vmax.f32 %v1719_v31, %v1778_v47 }
 0x25c   : > { %v1615_v48 = vpop.f32.mrf.mxu0  ;;  %2029 = vmatmul.mubr.bf16.gmra.mxu0 %v1833_v43 }
 0x25d   : > { %v1780_v50 = vmul.f32 0.1, %v1723_v41  ;;  %v1616_v55 = vadd.f32 %v1615_v48, %v3769_v9  ;;  %v1728_v52 = vpop.f32.mrf.mxu1  ;;  %v1811_v56 = vmax.f32 %v1721_v1, %v1779_v40  ;;  %v1727_v62 = vadd.f32 %v1726_v42, %v1614_v35 }
 0x25e   : > { %v1617_v53 = vpop.f32.mrf.mxu0 }
 0x25f   : > { %v1812_v57 = vmax.f32 %v1723_v41, %v1780_v50  ;;  %v1618_v58 = vadd.f32 %v1617_v53, %v3765_v8  ;;  %v1730_v59 = vpop.f32.mrf.mxu1  ;;  %v1729_v51 = vadd.f32 %v1728_v52, %v1616_v55  ;;  %v1835_v10 = vpack.c.bf16 %v1811_v56, %v1809_v54 }
 0x260   : > { %v1619_v61 = vpop.f32.mrf.mxu0  ;;  %v1781_v13 = vmul.f32 0.1, %v1727_v62 }
 0x261   : > { %v1731_v63 = vadd.f32 %v1730_v59, %v1618_v58  ;;  %v1620_v0 = vadd.f32 %v1619_v61, %v3769_v9  ;;  %v1732_v2 = vpop.f32.mrf.mxu1  ;;  %v1836_v4 = vpack.c.bf16 %v1812_v57, %v1810_v60  ;;  %v1782_v11 = vmul.f32 0.1, %v1729_v51 }
 0x262   : > { %v1623_v3 = vpop.f32.mrf.mxu0  ;;  %v1813_v21 = vmax.f32 %v1727_v62, %v1781_v13 }
 0x263   : > { %v1783_v5 = vmul.f32 0.1, %v1731_v63  ;;  %v1733_v6 = vadd.f32 %v1732_v2, %v1620_v0  ;;  %v1736_v7 = vpop.f32.mrf.mxu1  ;;  %2036 = vmatprep.mubr.bf16.mxu0 %v1836_v4  ;;  %v1624_v15 = vadd.f32 %v1623_v3, %v3765_v8  ;;  %v1814_v24 = vmax.f32 %v1729_v51, %v1782_v11 }
 0x264   : > { %v1625_v12 = vpop.f32.mrf.mxu0  ;;  %2037 = vmatmul.mubr.bf16.gmra.mxu0 %v1835_v10 }
 0x265   : > { %v1784_v14 = vmul.f32 0.1, %v1733_v6  ;;  %v1626_v16 = vadd.f32 %v1625_v12, %v3769_v9  ;;  %v1738_v17 = vpop.f32.mrf.mxu1  ;;  %v1815_v19 = vmax.f32 %v1731_v63, %v1783_v5  ;;  %v1737_v25 = vadd.f32 %v1736_v7, %v1624_v15 }
 0x266   : > { %v1627_v18 = vpop.f32.mrf.mxu0 }
 0x267   : > { %v1816_v20 = vmax.f32 %v1733_v6, %v1784_v14  ;;  %v1628_v22 = vadd.f32 %v1627_v18, %v3765_v8  ;;  %v1740_v23 = vpop.f32.mrf.mxu1  ;;  %v1739_v44 = vadd.f32 %v1738_v17, %v1626_v16  ;;  %v1837_v34 = vpack.c.bf16 %v1815_v19, %v1813_v21 }
 0x268   : > { %v1629_v46 = vpop.f32.mrf.mxu0  ;;  %v1785_v37 = vmul.f32 0.1, %v1737_v25 }
 0x269   : > { %v1741_v26 = vadd.f32 %v1740_v23, %v1628_v22  ;;  %v1630_v27 = vadd.f32 %v1629_v46, %v3769_v9  ;;  %v1742_v28 = vpop.f32.mrf.mxu1  ;;  %v1838_v30 = vpack.c.bf16 %v1816_v20, %v1814_v24  ;;  %v1786_v1 = vmul.f32 0.1, %v1739_v44 }
 0x26a   : > { %v1633_v29 = vpop.f32.mrf.mxu0  ;;  %v1817_v52 = vmax.f32 %v1737_v25, %v1785_v37 }
 0x26b   : > { %v1787_v31 = vmul.f32 0.1, %v1741_v26  ;;  %v1743_v32 = vadd.f32 %v1742_v28, %v1630_v27  ;;  %v1746_v33 = vpop.f32.mrf.mxu1  ;;  %2044 = vmatprep.mubr.bf16.mxu0 %v1838_v30  ;;  %v1634_v39 = vadd.f32 %v1633_v29, %v3765_v8  ;;  %v1818_v50 = vmax.f32 %v1739_v44, %v1786_v1  ;;  %v3086_v1 = vld [vmem:[#allocation12 + $0x8] sm:$0xff]  }
 0x26c   : > { %v1635_v36 = vpop.f32.mrf.mxu0  ;;  %2045 = vmatmul.mubr.bf16.gmra.mxu0 %v1837_v34  ;;  %v3085_v34 = vld [vmem:[#allocation12 + $0x10] sm:$0xff]  }
 0x26d   : > { %v1788_v38 = vmul.f32 0.1, %v1743_v32  ;;  %v1636_v40 = vadd.f32 %v1635_v36, %v3769_v9  ;;  %v1748_v41 = vpop.f32.mrf.mxu1  ;;  %v1819_v43 = vmax.f32 %v1741_v26, %v1787_v31  ;;  %v1747_v53 = vadd.f32 %v1746_v33, %v1634_v39  ;;  %v3084_v33 = vld [vmem:[#allocation12 + $0x18] sm:$0xff]   ;;  %v3087_v36 = vld [vmem:[#allocation12] sm:$0xff]  }
 0x26e   : > { %v1637_v42 = vpop.f32.mrf.mxu0 }
 0x26f   : > { %v1820_v47 = vmax.f32 %v1743_v32, %v1788_v38  ;;  %v1638_v48 = vadd.f32 %v1637_v42, %v3765_v8  ;;  %v1750_v49 = vpop.f32.mrf.mxu1  ;;  %v1749_v35 = vadd.f32 %v1748_v41, %v1636_v40  ;;  %v1839_v62 = vpack.c.bf16 %v1819_v43, %v1817_v52  ;;  %v3082_v32 = vld [vmem:[#allocation12 + $0x28] sm:$0xff]   ;;  %v3806_v38 = vld [vmem:[%s3912_s6] ss:$0 sm:$0xff] }
 0x270   : > { %v1639_v55 = vpop.f32.mrf.mxu0  ;;  %v1789_v2 = vmul.f32 0.1, %v1747_v53  ;;  %2757 = vmatprep.subr.bf16.mxu1 %v3082_v32 }
 0x271   : > { %v1751_v56 = vadd.f32 %v1750_v49, %v1638_v48  ;;  %v1640_v57 = vadd.f32 %v1639_v55, %v3769_v9  ;;  %v1752_v58 = vpop.f32.mrf.mxu1  ;;  %v1840_v60 = vpack.c.bf16 %v1820_v47, %v1818_v50  ;;  %v1790_v63 = vmul.f32 0.1, %v1749_v35  ;;  %2758 = vmatpush3.bf16.msra.mxu1 %v3082_v32 }
 0x272   : > { %v1643_v59 = vpop.f32.mrf.mxu0  ;;  %v1821_v17 = vmax.f32 %v1747_v53, %v1789_v2 }
 0x273   : > { %v1791_v51 = vmul.f32 0.1, %v1751_v56  ;;  %v1753_v61 = vadd.f32 %v1752_v58, %v1640_v57  ;;  %v1756_v54 = vpop.f32.mrf.mxu1  ;;  %2052 = vmatprep.mubr.bf16.mxu0 %v1840_v60  ;;  %v1644_v4 = vadd.f32 %v1643_v59, %v3765_v8  ;;  %v1822_v15 = vmax.f32 %v1749_v35, %v1790_v63 }
 0x274   : > { %v1645_v0 = vpop.f32.mrf.mxu0  ;;  %2053 = vmatmul.mubr.bf16.gmra.mxu0 %v1839_v62 }
 0x275   : > { %v1792_v3 = vmul.f32 0.1, %v1753_v61  ;;  %v1646_v5 = vadd.f32 %v1645_v0, %v3769_v9  ;;  %v1758_v6 = vpop.f32.mrf.mxu1  ;;  %v1823_v10 = vmax.f32 %v1751_v56, %v1791_v51  ;;  %v1757_v18 = vadd.f32 %v1756_v54, %v1644_v4 }
 0x276   : > { %v1647_v7 = vpop.f32.mrf.mxu0 }
 0x277   : > { %v1824_v11 = vmax.f32 %v1753_v61, %v1792_v3  ;;  %v1759_v12 = vadd.f32 %v1758_v6, %v1646_v5  ;;  %v1648_v13 = vadd.f32 %v1647_v7, %v3765_v8  ;;  %v1760_v14 = vpop.f32.mrf.mxu1  ;;  %v1841_v21 = vpack.c.bf16 %v1823_v10, %v1821_v17 }
 0x278   : > { %v1649_v16 = vpop.f32.mrf.mxu0  ;;  %v1793_v25 = vmul.f32 0.1, %v1757_v18 }
 0x279   : > { %v1761_v19 = vadd.f32 %v1760_v14, %v1648_v13  ;;  %v1650_v20 = vadd.f32 %v1649_v16, %v3769_v9  ;;  %v1762_v22 = vpop.f32.mrf.mxu1  ;;  %v1842_v23 = vpack.c.bf16 %v1824_v11, %v1822_v15  ;;  %v1794_v24 = vmul.f32 0.1, %v1759_v12  ;;  %v3083_v9 = vld [vmem:[#allocation12 + $0x20] sm:$0xff]  }
 0x27a   : > { %v1825_v29 = vmax.f32 %v1757_v18, %v1793_v25  ;;  %2759 = vmatprep.subr.bf16.mxu1 %v3083_v9 }
 0x27b   : > { %v1795_v44 = vmul.f32 0.1, %v1761_v19  ;;  %v1763_v46 = vadd.f32 %v1762_v22, %v1650_v20  ;;  %2060 = vmatprep.mubr.bf16.mxu0 %v1842_v23  ;;  %v1826_v27 = vmax.f32 %v1759_v12, %v1794_v24  ;;  %2760 = vmatpush3.bf16.msra.mxu1 %v3083_v9 }
 0x27c   : > { %2061 = vmatmul.mubr.bf16.gmra.mxu0 %v1841_v21  ;;  %2761 = vmatprep.subr.bf16.mxu1 %v3084_v33 }
 0x27d   : > { %v1796_v26 = vmul.f32 0.1, %v1763_v46  ;;  %v1827_v8 = vmax.f32 %v1761_v19, %v1795_v44 }
 0x27f   : > { %v1828_v28 = vmax.f32 %v1763_v46, %v1796_v26  ;;  %v1843_v31 = vpack.c.bf16 %v1827_v8, %v1825_v29  ;;  %2762 = vmatpush3.bf16.msra.mxu1 %v3084_v33 }
 0x280   : > { %2763 = vmatprep.subr.bf16.mxu1 %v3085_v34 }
 0x281   : > { %v1844_v30 = vpack.c.bf16 %v1828_v28, %v1826_v27 }
 0x283   : > { %2068 = vmatprep.mubr.bf16.mxu0 %v1844_v30  ;;  %2764 = vmatpush3.bf16.msra.mxu1 %v3085_v34 }
 0x284   : > { %2069 = vmatmul.mubr.bf16.gmra.mxu0 %v1843_v31  ;;  %2765 = vmatprep.subr.bf16.mxu1 %v3086_v1 }
 0x287   : > { %2766 = vmatpush3.bf16.msra.mxu1 %v3086_v1 }
 0x288   : > { %2767 = vmatprep.subr.bf16.mxu1 %v3087_v36 }
 0x28b   : > { %2768 = vmatpush3.bf16.msra.mxu1 %v3087_v36 }
 0x30c   : > { %v2680_v37 = vpop.f32.mrf.mxu0 }
 0x30e   : > { %v2681_v39 = vpop.f32.mrf.mxu0 }
 0x30f   : > { %v2682_v40 = vadd.f32 %v2681_v39, %v2680_v37 }
 0x310   : > { %v2683_v41 = vpop.f32.mrf.mxu0 }
 0x311   : > { %v2015_v42 = vadd.f32 %v2682_v40, %v3806_v38 }
 0x312   : > { %v2684_v43 = vpop.f32.mrf.mxu0 }
 0x313   : > { %v2685_v47 = vadd.f32 %v2684_v43, %v2683_v41  ;;  %v2077_v48 = vmul.f32 0.1, %v2015_v42 }
 0x314   : > { %v2686_v50 = vpop.f32.mrf.mxu0 }
 0x315   : > { %v2018_v49 = vadd.f32 %v2685_v47, %v3806_v38  ;;  %v2093_v53 = vmax.f32 %v2015_v42, %v2077_v48 }
 0x316   : > { %v2687_v55 = vpop.f32.mrf.mxu0 }
 0x317   : > { %v2078_v35 = vmul.f32 0.1, %v2018_v49  ;;  %v2688_v52 = vadd.f32 %v2687_v55, %v2686_v50 }
 0x318   : > { %v2689_v57 = vpop.f32.mrf.mxu0 }
 0x319   : > { %v2094_v56 = vmax.f32 %v2018_v49, %v2078_v35  ;;  %v2023_v58 = vadd.f32 %v2688_v52, %v3806_v38 }
 0x31a   : > { %v2690_v59 = vpop.f32.mrf.mxu0 }
 0x31b   : > { %v2109_v60 = vpack.c.bf16 %v2094_v56, %v2093_v53  ;;  %v2691_v51 = vadd.f32 %v2690_v59, %v2689_v57  ;;  %v2079_v54 = vmul.f32 0.1, %v2023_v58 }
 0x31c   : > { %v2692_v61 = vpop.f32.mrf.mxu0 }
 0x31d   : > { %2769 = vmatprep.mubr.bf16.mxu1 %v2109_v60  ;;  %v2026_v62 = vadd.f32 %v2691_v51, %v3806_v38  ;;  %v2095_v4 = vmax.f32 %v2023_v58, %v2079_v54 }
 0x31e   : > { %v2693_v63 = vpop.f32.mrf.mxu0 }
 0x31f   : > { %v2080_v0 = vmul.f32 0.1, %v2026_v62  ;;  %v2694_v2 = vadd.f32 %v2693_v63, %v2692_v61 }
 0x320   : > { %v2695_v3 = vpop.f32.mrf.mxu0 }
 0x321   : > { %v2096_v5 = vmax.f32 %v2026_v62, %v2080_v0  ;;  %v2031_v6 = vadd.f32 %v2694_v2, %v3806_v38 }
 0x322   : > { %v2696_v7 = vpop.f32.mrf.mxu0 }
 0x323   : > { %v2110_v10 = vpack.c.bf16 %v2096_v5, %v2095_v4  ;;  %v2697_v11 = vadd.f32 %v2696_v7, %v2695_v3  ;;  %v2081_v13 = vmul.f32 0.1, %v2031_v6 }
 0x324   : > { %v2698_v12 = vpop.f32.mrf.mxu0 }
 0x325   : > { %v2034_v14 = vadd.f32 %v2697_v11, %v3806_v38  ;;  %2770 = vmatmul.mubr.bf16.vlgmr.msra.gmra.mxu1 %v2110_v10  ;;  %v2097_v19 = vmax.f32 %v2031_v6, %v2081_v13 }
 0x326   : > { %v2699_v15 = vpop.f32.mrf.mxu0 }
 0x327   : > { %v2082_v16 = vmul.f32 0.1, %v2034_v14  ;;  %v2700_v17 = vadd.f32 %v2699_v15, %v2698_v12 }
 0x328   : > { %v2701_v18 = vpop.f32.mrf.mxu0 }
 0x329   : > { %v2098_v20 = vmax.f32 %v2034_v14, %v2082_v16  ;;  %v2039_v22 = vadd.f32 %v2700_v17, %v3806_v38 }
 0x32a   : > { %v2702_v23 = vpop.f32.mrf.mxu0 }
 0x32b   : > { %v2703_v24 = vadd.f32 %v2702_v23, %v2701_v18  ;;  %v2111_v44 = vpack.c.bf16 %v2098_v20, %v2097_v19  ;;  %v2083_v21 = vmul.f32 0.1, %v2039_v22  ;;  %v2366_v23 = vld [vmem:[#allocation2] sm:$0x1] }
 0x32c   : > { %v2704_v46 = vpop.f32.mrf.mxu0  ;;  %2369 = vperm.xlu0 %2911, %v2366_v23  }
 0x32d   : > { %v2042_v25 = vadd.f32 %v2703_v24, %v3806_v38  ;;  %2773 = vmatprep.mubr.bf16.mxu1 %v2111_v44  ;;  %v2099_v29 = vmax.f32 %v2039_v22, %v2083_v21  ;;  %v3341_v22 = vmov 0.0   ;;  %v3829_v24 = vld [vmem:[%s3914_s8] ss:$0 sm:$0xff] }
 0x32e   : > { %v2705_v26 = vpop.f32.mrf.mxu0  ;;  %2785 = vmatprep.subr.bf16.mxu0 %v3341_v22  ;;  %2801 = vmatprep.mubr.msk.bf16.mxu0 %vm3342_vm0, %v3341_v22 }
 0x32f   : > { %v2084_v27 = vmul.f32 0.1, %v2042_v25  ;;  %v2706_v8 = vadd.f32 %v2705_v26, %v2704_v46 }
 0x330   : > { %v2707_v28 = vpop.f32.mrf.mxu0 }
 0x331   : > { %v2100_v30 = vmax.f32 %v2042_v25, %v2084_v27  ;;  %v2047_v31 = vadd.f32 %v2706_v8, %v3806_v38 }
 0x332   : > { %v2708_v32 = vpop.f32.mrf.mxu0 }
 0x333   : > { %v2709_v9 = vadd.f32 %v2708_v32, %v2707_v28  ;;  %v2112_v33 = vpack.c.bf16 %v2100_v30, %v2099_v29  ;;  %v2085_v1 = vmul.f32 0.1, %v2047_v31 }
 0x334   : > { %v2710_v34 = vpop.f32.mrf.mxu0 }
 0x335   : > { %v2050_v36 = vadd.f32 %v2709_v9, %v3806_v38  ;;  %2774 = vmatmul.mubr.bf16.gmra.mxu1 %v2112_v33  ;;  %v2101_v42 = vmax.f32 %v2047_v31, %v2085_v1 }
 0x336   : > { %v2711_v37 = vpop.f32.mrf.mxu0 }
 0x337   : > { %v2086_v39 = vmul.f32 0.1, %v2050_v36  ;;  %v2712_v40 = vadd.f32 %v2711_v37, %v2710_v34 }
 0x338   : > { %v2713_v41 = vpop.f32.mrf.mxu0 }
 0x339   : > { %v2102_v43 = vmax.f32 %v2050_v36, %v2086_v39  ;;  %v2055_v47 = vadd.f32 %v2712_v40, %v3806_v38 }
 0x33a   : > { %v2714_v48 = vpop.f32.mrf.mxu0 }
 0x33b   : > { %v2715_v49 = vadd.f32 %v2714_v48, %v2713_v41  ;;  %v2113_v50 = vpack.c.bf16 %v2102_v43, %v2101_v42  ;;  %v2087_v55 = vmul.f32 0.1, %v2055_v47 }
 0x33c   : > { %v2716_v35 = vpop.f32.mrf.mxu0 }
 0x33d   : > { %v2058_v52 = vadd.f32 %v2715_v49, %v3806_v38  ;;  %2777 = vmatprep.mubr.bf16.mxu1 %v2113_v50  ;;  %v2103_v59 = vmax.f32 %v2055_v47, %v2087_v55 }
 0x33e   : > { %v2717_v53 = vpop.f32.mrf.mxu0 }
 0x33f   : > { %v2088_v56 = vmul.f32 0.1, %v2058_v52  ;;  %v2718_v57 = vadd.f32 %v2717_v53, %v2716_v35 }
 0x340   : > { %v2719_v58 = vpop.f32.mrf.mxu0 }
 0x341   : > { %v2104_v60 = vmax.f32 %v2058_v52, %v2088_v56  ;;  %v2063_v51 = vadd.f32 %v2718_v57, %v3806_v38 }
 0x342   : > { %v2720_v61 = vpop.f32.mrf.mxu0 }
 0x343   : > { %v2721_v54 = vadd.f32 %v2720_v61, %v2719_v58  ;;  %v2114_v62 = vpack.c.bf16 %v2104_v60, %v2103_v59  ;;  %v2089_v0 = vmul.f32 0.1, %v2063_v51 }
 0x344   : > { %v2722_v63 = vpop.f32.mrf.mxu0 }
 0x345   : > { %v2066_v2 = vadd.f32 %v2721_v54, %v3806_v38  ;;  %2778 = vmatmul.mubr.bf16.gmra.mxu1 %v2114_v62  ;;  %v2105_v7 = vmax.f32 %v2063_v51, %v2089_v0 }
 0x346   : > { %v2723_v3 = vpop.f32.mrf.mxu0 }
 0x347   : > { %v2090_v4 = vmul.f32 0.1, %v2066_v2  ;;  %v2724_v5 = vadd.f32 %v2723_v3, %v2722_v63 }
 0x348   : > { %v2725_v6 = vpop.f32.mrf.mxu0 }
 0x349   : > { %v2106_v10 = vmax.f32 %v2066_v2, %v2090_v4  ;;  %v2071_v11 = vadd.f32 %v2724_v5, %v3806_v38 }
 0x34a   : > { %v2726_v12 = vpop.f32.mrf.mxu0 }
 0x34b   : > { %v2727_v13 = vadd.f32 %v2726_v12, %v2725_v6  ;;  %v2115_v14 = vpack.c.bf16 %v2106_v10, %v2105_v7  ;;  %v2091_v15 = vmul.f32 0.1, %v2071_v11 }
 0x34d   : > { %v2074_v16 = vadd.f32 %v2727_v13, %v3806_v38  ;;  %2781 = vmatprep.mubr.bf16.mxu1 %v2115_v14  ;;  %v2107_v18 = vmax.f32 %v2071_v11, %v2091_v15 }
 0x34f   : > { %v2092_v17 = vmul.f32 0.1, %v2074_v16 }
 0x351   : > { %v2108_v19 = vmax.f32 %v2074_v16, %v2092_v17 }
 0x353   : > { %v2116_v20 = vpack.c.bf16 %v2108_v19, %v2107_v18 }
 0x355   : > { %2782 = vmatmul.mubr.bf16.gmra.mxu1 %v2116_v20 }
 0x3e5   : > { %v2771_v38 = vpop.f32.mrf.mxu1 }
 0x3e6   : > { %v2231_v44 = vadd.f32 %v2771_v38, %v3829_v24 }
 0x3e7   : > { %v2222_v46 = vpop.f32.mrf.mxu1 }
 0x3e8   : > { %v2223_v21 = vadd.f32 %v3829_v24, %v2222_v46  ;;  %v2287_v26 = vmul.f32 0.1, %v2231_v44 }
 0x3e9   : > { %v2772_v25 = vpop.f32.mrf.mxu1 }
 0x3ea   : > { %v2234_v27 = vadd.f32 %v2772_v25, %v3829_v24  ;;  %v2285_v28 = vmul.f32 0.1, %v2223_v21  ;;  %v2303_v31 = vmax.f32 %v2231_v44, %v2287_v26 }
 0x3eb   : > { %v2225_v8 = vpop.f32.mrf.mxu1 }
 0x3ec   : > { %v2288_v29 = vmul.f32 0.1, %v2234_v27  ;;  %v2226_v30 = vadd.f32 %v3829_v24, %v2225_v8  ;;  %v2301_v33 = vmax.f32 %v2223_v21, %v2285_v28 }
 0x3ee   : > { %v2304_v32 = vmax.f32 %v2234_v27, %v2288_v29  ;;  %v2286_v9 = vmul.f32 0.1, %v2226_v30 }
 0x3f0   : > { %v3835_v34 = vpack.c.bf16 %v2304_v32, %v2303_v31  ;;  %v2302_v1 = vmax.f32 %v2226_v30, %v2286_v9  ;;  %v2370_v31 = vpop.permute.xlu0 %2369 }
 0x3f1   : > { %v2375_v32 = vrot.slane %v2370_v31, %v3621_v45 }
 0x3f2   : > { %v3837_v36 = vpack.c.bf16 %v2302_v1, %v2301_v33 }
 0x3f5   : > { %v2775_v37 = vpop.f32.mrf.mxu1 }
 0x3f6   : > { %v2247_v18 = vadd.f32 %v2775_v37, %v3829_v24 }
 0x3f7   : > { %v2238_v39 = vpop.f32.mrf.mxu1 }
 0x3f8   : > { %v2291_v38 = vmul.f32 0.1, %v2247_v18  ;;  %v2239_v25 = vadd.f32 %v3829_v24, %v2238_v39 }
 0x3f9   : > { %v2776_v40 = vpop.f32.mrf.mxu1 }
 0x3fa   : > { %v2250_v16 = vadd.f32 %v2776_v40, %v3829_v24  ;;  %v2307_v21 = vmax.f32 %v2247_v18, %v2291_v38  ;;  %v2289_v8 = vmul.f32 0.1, %v2239_v25 }
 0x3fb   : > { %v2241_v41 = vpop.f32.mrf.mxu1 }
 0x3fc   : > { %v2292_v20 = vmul.f32 0.1, %v2250_v16  ;;  %v2242_v46 = vadd.f32 %v3829_v24, %v2241_v41  ;;  %v2305_v29 = vmax.f32 %v2239_v25, %v2289_v8 }
 0x3fe   : > { %v2308_v44 = vmax.f32 %v2250_v16, %v2292_v20  ;;  %v2290_v27 = vmul.f32 0.1, %v2242_v46 }
 0x400   : > { %v2320_v26 = vpack.c.bf16 %v2308_v44, %v2307_v21  ;;  %v2306_v28 = vmax.f32 %v2242_v46, %v2290_v27 }
 0x402   : > { %v2319_v30 = vpack.c.bf16 %v2306_v28, %v2305_v29 }
 0x405   : > { %v2779_v42 = vpop.f32.mrf.mxu1 }
 0x406   : > { %v2263_v2 = vadd.f32 %v2779_v42, %v3829_v24 }
 0x407   : > { %v2254_v43 = vpop.f32.mrf.mxu1 }
 0x408   : > { %v2295_v6 = vmul.f32 0.1, %v2263_v2  ;;  %v2255_v12 = vadd.f32 %v3829_v24, %v2254_v43 }
 0x409   : > { %v2780_v47 = vpop.f32.mrf.mxu1 }
 0x40a   : > { %v2266_v63 = vadd.f32 %v2780_v47, %v3829_v24  ;;  %v2311_v11 = vmax.f32 %v2263_v2, %v2295_v6  ;;  %v2293_v15 = vmul.f32 0.1, %v2255_v12 }
 0x40b   : > { %v2257_v48 = vpop.f32.mrf.mxu1 }
 0x40c   : > { %v2296_v4 = vmul.f32 0.1, %v2266_v63  ;;  %v2258_v10 = vadd.f32 %v3829_v24, %v2257_v48  ;;  %v2309_v19 = vmax.f32 %v2255_v12, %v2293_v15 }
 0x40e   : > { %v2312_v7 = vmax.f32 %v2266_v63, %v2296_v4  ;;  %v2294_v14 = vmul.f32 0.1, %v2258_v10 }
 0x410   : > { %v2322_v13 = vpack.c.bf16 %v2312_v7, %v2311_v11  ;;  %v2310_v17 = vmax.f32 %v2258_v10, %v2294_v14 }
 0x412   : > { %v2321_v23 = vpack.c.bf16 %v2310_v17, %v2309_v19 }
 0x415   : > { %v2783_v49 = vpop.f32.mrf.mxu1 }
 0x416   : > { %v2279_v50 = vadd.f32 %v2783_v49, %v3829_v24 }
 0x417   : > { %v2270_v35 = vpop.f32.mrf.mxu1 }
 0x418   : > { %v2299_v52 = vmul.f32 0.1, %v2279_v50  ;;  %v2271_v60 = vadd.f32 %v3829_v24, %v2270_v35 }
 0x419   : > { %v2784_v55 = vpop.f32.mrf.mxu1 }
 0x41a   : > { %v2282_v53 = vadd.f32 %v2784_v55, %v3829_v24  ;;  %v2315_v59 = vmax.f32 %v2279_v50, %v2299_v52  ;;  %v2297_v62 = vmul.f32 0.1, %v2271_v60 }
 0x41b   : > { %v2273_v56 = vpop.f32.mrf.mxu1 }
 0x41c   : > { %v2300_v57 = vmul.f32 0.1, %v2282_v53  ;;  %v2274_v58 = vadd.f32 %v3829_v24, %v2273_v56  ;;  %v2313_v3 = vmax.f32 %v2271_v60, %v2297_v62  ;;  %v2325_v24 = vld [vmem:[%s3915_s9] sm:$0xf] }
 0x41e   : > { %v2316_v51 = vmax.f32 %v2282_v53, %v2300_v57  ;;  %v2298_v54 = vmul.f32 0.1, %v2274_v58 }
 0x420   : > { %v2324_v61 = vpack.c.bf16 %v2316_v51, %v2315_v59  ;;  %v2314_v0 = vmax.f32 %v2274_v58, %v2298_v54 }
 0x422   : > { %2786 = vmatpush3.bf16.xpose.msra.mxu0 %v2324_v61  ;;  %v2323_v5 = vpack.c.bf16 %v2314_v0, %v2313_v3 }
 0x423   : > { %2787 = vmatprep.subr.bf16.mxu0 %v3341_v22 }
 0x42a   : > { %2788 = vmatpush3.bf16.xpose.msra.mxu0 %v2323_v5 }
 0x42b   : > { %2789 = vmatprep.subr.bf16.mxu0 %v3341_v22 }
 0x432   : > { %2790 = vmatpush3.bf16.xpose.msra.mxu0 %v2322_v13 }
 0x433   : > { %2791 = vmatprep.subr.bf16.mxu0 %v3341_v22 }
 0x43a   : > { %2792 = vmatpush3.bf16.xpose.msra.mxu0 %v2321_v23 }
 0x43b   : > { %2793 = vmatprep.subr.bf16.mxu0 %v3341_v22 }
 0x442   : > { %2794 = vmatpush3.bf16.xpose.msra.mxu0 %v2320_v26 }
 0x443   : > { %2795 = vmatprep.subr.bf16.mxu0 %v3341_v22 }
 0x44a   : > { %2796 = vmatpush3.bf16.xpose.msra.mxu0 %v2319_v30 }
 0x44b   : > { %2797 = vmatprep.subr.bf16.mxu0 %v3341_v22 }
 0x452   : > { %2798 = vmatpush3.bf16.xpose.msra.mxu0 %v3835_v34 }
 0x453   : > { %2799 = vmatprep.subr.bf16.mxu0 %v3341_v22 }
 0x45a   : > { %2800 = vmatpush3.bf16.xpose.msra.mxu0 %v3837_v36 }
 0x461   : > { %2802 = vmatmul.mubr.bf16.vlgmr.msra.gmra.mxu0 %v2325_v24 }
 0x521   : > { %v2360_v9 = vpop.f32.mrf.mxu0 }
 0x522   : > { %v2376_v33 = vadd.f32 %v2375_v32, %v2360_v9 }
 0x523   : > { %v2803_v1 = vpop.f32.mrf.mxu0 }
 0x524   : > { %v2659_v37 = vmul.f32 -1.442695, %v2376_v33 }
 0x525   : > { %v2363_v34 = vpop.f32.mrf.mxu0 }
 0x526   : > { %3088 = vpow2.f32 %v2659_v37 }
 0x527   : > { %v2804_v22 = vpop.f32.mrf.mxu0 }
 0x533   : > { %v3089_v39 = vpop.eup %3088 }
 0x534   : > { %v2380_v36 = vadd.f32 1.0, %v3089_v39 }
 0x536   : > { %3090 = vrcp.f32 %v2380_v36 }
 0x543   : > { %v3091_v45 = vpop.eup %3090 }
 0x544   : > { %2383 = vst [vmem:[%s476_s3] sm:$0x1] %v3091_v45 }
 0x545   : > { %3263 = shalt.err (!%p3260_p3)
}
 0x546   : > { %s3264_s16 = scalar_lea.hbm %s3869_s18, 16  ;;  %s3268_s27 = scalar_lea.hbm %s3917_s11, 32 }
 0x547   : > { %p3265_p1 = scmp.ne.s32.totalorder %s3869_s18, %s3264_s16  ;;  %p3269_p11 = scmp.lt.s32.totalorder %s3869_s18, %s3917_s11 }
 0x548   : > { %p3270_p12 = scmp.lt.s32.totalorder %s3268_s27, %s3264_s16 }
 0x549   : > { %p3266_p6 = pnand %p3265_p1, %p3950_p4 }
 0x54a   : > { %p3271_p13 = por %p3270_p12, %p3269_p11 }
 0x54b   : > { %p3267_p9 = pneg %p3266_p6 }
 0x54d   : > { %p3272_p0 = pnand %p3271_p13, %p3267_p9 }
 0x54f   : > { %3275 = shalt.err (!%p3272_p0)
}
 0x550   : > { %2827 = dma.vmem_to_hbm [thread:$0]  (%p3950_p4), %s2398_s15, 16, %s3869_s18, %s2385_s1  }
 0x551 PF: > { %s2409_s3 = sand.u32 1, %s3314_s19   ;;  %p3951_p2 = scmp.ne.s32.totalorder %s3938_s29, 0 }
 0x552   : > { %p3952_p5 = scmp.ge.s32.totalorder %s3326_s22, 2  ;;  %s2410_s5 = scalar_lea.sflag [#allocation5], %s2409_s3 }
 0x554   : > { %p2850_p7 = pnand %p3952_p5, %p3951_p2 }
 0x556   : > { %p2851_p10 = pneg %p2850_p7 }
 0x558   : > { %3309 = dma.done.wait (%p2851_p10), %s2410_s5, 16  }
 0x559   : > { %3311 = vsyncadd (%p2851_p10), %s2410_s5, 4294967280  ;;  %p29_p8 = scmp.ge.s32.totalorder %s3502_s12, 4   ;;  %s3953_s19 = smov %s3318_s20 }
 0x55a   : > { %s3954_s20 = smov %s3322_s21  ;;  %s3955_s21 = smov %s3514_s17 }
 0x55b   : > { %s3956_s22 = smov %s3502_s12  ;;  %31 = sbr.rel (!%p29_p8) target bundleno = 13 (0xd), region = 129 }
 0x560   :  { %2414 = vsyncpa [#allocation4], 1 }
 0x561   :  { %2416 = vsyncpa [#allocation4 + $0x1], 1 }
 0x562   :  { %2417 = vsyncpa [#allocation7], 1 }
 0x563   :  { %2418 = vsyncpa [#allocation10], 1 }
 0x564   :  { %2419 = vsyncpa [#allocation13], 1 }
 0x565   :  { %2420 = vsyncpa [#allocation5], 1 }
 0x566   :  { %2422 = vsyncpa [#allocation5 + $0x1], 1 }

</bundles_post_ra>
